<compile_context>
chip_gen: v7x
topology: tpu7x:2x2x1
jax: 0.10.0
libtpu: 0.0.40
codegen_flags: <defaults>
</compile_context>

<pallas_src>
import functools

import jax
import jax.numpy as jnp
from jax import lax
from jax.experimental import pallas as pl
from jax.experimental.pallas import tpu as pltpu


# ------------------------------- Pallas kernel -------------------------------
def bottleneck_kernel(x_ref, w1_ref, w2_ref, w3_ref, bias_ref, mask_ref, o_ref,
                      *, W):
    """One row-tile (a whole number of images, flattened to sublanes) per step.

    x_ref    : (rows, Cin)        f32   pixels on sublanes, channels on lanes
    w1_ref   : (Cin, P)           bf16  1x1 conv, BN1 scale pre-folded
    w2_ref   : (9*P, P)           bf16  3x3 conv, row = (ky*3+kx)*P + cin, BN2 folded
    w3_ref   : (P, Cin)           bf16  1x1 conv, BN3 scale pre-folded
    bias_ref : (8, Cin)           f32   row0=b1[:P], row1=b2[:P], row2=b3[:Cin]
    mask_ref : (9, rows, P)       f32   precomputed zero-padding border masks
    o_ref    : (rows, Cin)        f32
    """
    rows = x_ref.shape[0]
    Cin = x_ref.shape[1]
    P = w1_ref.shape[1]

    # ---- conv1 (1x1, scale folded into w1) + bias + ReLU --------------------
    y1 = jnp.dot(x_ref[...].astype(jnp.bfloat16), w1_ref[...],
                 preferred_element_type=jnp.float32)
    y1 = jnp.maximum(y1 + bias_ref[0:1, 0:P], 0.0)            # (rows, P) f32

    # ---- conv2 (3x3, pad=1): im2col via XLU sublane rolls + precomputed ----
    # ---- masks, split into 3 accumulated K=3P dots (grouped by ky) ----------
    y2 = None
    for ky in range(3):
        taps = []
        for kx in range(3):
            t = ky * 3 + kx
            off = (ky - 1) * W + (kx - 1)                     # flat source offset
            if off == 0:
                v = y1
            else:
                v = pltpu.roll(y1, shift=(-off) % rows, axis=0) * mask_ref[t]
            taps.append(v.astype(jnp.bfloat16))
        group = jnp.concatenate(taps, axis=1)                 # (rows, 3P) bf16
        d = jnp.dot(group, w2_ref[ky * 3 * P:(ky + 1) * 3 * P, :],
                    preferred_element_type=jnp.float32)
        y2 = d if y2 is None else y2 + d
    y2 = jnp.maximum(y2 + bias_ref[1:2, 0:P], 0.0)            # (rows, P) f32

    # ---- conv3 (1x1, scale folded) + bias, identity residual, ReLU ----------
    y3 = jnp.dot(y2.astype(jnp.bfloat16), w3_ref[...],
                 preferred_element_type=jnp.float32)
    # Re-read x from the resident VMEM block only now (short live range).
    o_ref[...] = jnp.maximum(y3 + bias_ref[2:3, 0:Cin] + x_ref[...], 0.0)


def bottleneck_pallas(x_flat, w1, w2, w3, bias_pack, masks, *, W, n_tiles):
    R, Cin = x_flat.shape
    P = w1.shape[1]
    K2 = w2.shape[0]                                          # 9*P
    tile_rows = R // n_tiles

    rep = lambda i: (0, 0)            # constant blocks: same tile every step

    return pl.pallas_call(
        functools.partial(bottleneck_kernel, W=W),
        out_shape=jax.ShapeDtypeStruct((R, Cin), jnp.float32),
        grid=(n_tiles,),
        in_specs=[
            pl.BlockSpec((tile_rows, Cin), lambda i: (i, 0)),       # x   (f32)
            pl.BlockSpec((Cin, P), rep),                            # w1  (bf16)
            pl.BlockSpec((K2, P), rep),                             # w2  (bf16)
            pl.BlockSpec((P, Cin), rep),                            # w3  (bf16)
            pl.BlockSpec((8, Cin), rep),                            # biases (f32)
            pl.BlockSpec((9, tile_rows, P), lambda i: (0, 0, 0)),   # masks (f32)
        ],
        out_specs=pl.BlockSpec((tile_rows, Cin), lambda i: (i, 0)),
        compiler_params=pltpu.CompilerParams(
            dimension_semantics=("parallel",)),
    )(x_flat, w1, w2, w3, bias_pack, masks)


# ------------------------- pure-JAX references --------------------------------
def bn_fold(gamma, beta, mean, var, eps=1e-5):
    scale = gamma / jnp.sqrt(var + eps)
    bias = beta - mean * scale
    return scale, bias


def conv_nchw(x, w, padding, cast_dtype):
    return lax.conv_general_dilated(
        x.astype(cast_dtype), w.astype(cast_dtype),
        window_strides=(1, 1), padding=padding,
        dimension_numbers=("NCHW", "OIHW", "NCHW"),
        preferred_element_type=jnp.float32)


def bottleneck_ref(x, p, cast_dtype=jnp.float32):
    """Module semantics (unfolded BN), NCHW."""
    s1, b1 = bn_fold(p["g1"], p["be1"], p["m1"], p["v1"])
    s2, b2 = bn_fold(p["g2"], p["be2"], p["m2"], p["v2"])
    s3, b3 = bn_fold(p["g3"], p["be3"], p["m3"], p["v3"])
    out = conv_nchw(x, p["cw1"], [(0, 0), (0, 0)], cast_dtype)
    out = jnp.maximum(out * s1[None, :, None, None] + b1[None, :, None, None], 0.0)
    out = conv_nchw(out, p["cw2"], [(1, 1), (1, 1)], cast_dtype)
    out = jnp.maximum(out * s2[None, :, None, None] + b2[None, :, None, None], 0.0)
    out = conv_nchw(out, p["cw3"], [(0, 0), (0, 0)], cast_dtype)
    out = out * s3[None, :, None, None] + b3[None, :, None, None]
    return jnp.maximum(out + x, 0.0)          # downsample is None -> identity


def bottleneck_ref_folded(x_flat, w1b, w2b, w3b, b1, b2, b3, *, N, H, W, P):
    """Strict ref: same folded bf16 weights / bf16 activations, f32 accumulate."""
    y1 = jnp.dot(x_flat.astype(jnp.bfloat16), w1b,
                 preferred_element_type=jnp.float32) + b1[None, :]
    y1 = jnp.maximum(y1, 0.0)
    y1b = y1.astype(jnp.bfloat16).reshape(N, H, W, P)
    pad = jnp.pad(y1b, ((0, 0), (1, 1), (1, 1), (0, 0)))
    cols = [pad[:, ky:ky + H, kx:kx + W, :] for ky in range(3) for kx in range(3)]
    im2col = jnp.concatenate(cols, axis=-1).reshape(N * H * W, 9 * P)
    y2 = jnp.dot(im2col, w2b, preferred_element_type=jnp.float32) + b2[None, :]
    y2 = jnp.maximum(y2, 0.0)
    y3 = jnp.dot(y2.astype(jnp.bfloat16), w3b,
                 preferred_element_type=jnp.float32) + b3[None, :]
    return jnp.maximum(y3 + x_flat, 0.0)


# ----------------------------------- main ------------------------------------
if __name__ == "__main__":
    key = jax.random.PRNGKey(0)
    N, inplanes, H, W = 2, 128, 8, 8        # inplanes == planes * expansion
    planes = inplanes // 4                  # expansion = 4
    HW = H * W

    keys = jax.random.split(key, 16)
    p = {
        # conv weights (PyTorch OIHW layout)
        "cw1": 0.1 * jax.random.normal(keys[0], (planes, inplanes, 1, 1), jnp.float32),
        "cw2": 0.1 * jax.random.normal(keys[1], (planes, planes, 3, 3), jnp.float32),
        "cw3": 0.1 * jax.random.normal(keys[2], (planes * 4, planes, 1, 1), jnp.float32),
        # bn1
        "g1": 1.0 + 0.1 * jax.random.normal(keys[3], (planes,), jnp.float32),
        "be1": 0.1 * jax.random.normal(keys[4], (planes,), jnp.float32),
        "m1": 0.1 * jax.random.normal(keys[5], (planes,), jnp.float32),
        "v1": 0.5 + jax.random.uniform(keys[6], (planes,), jnp.float32),
        # bn2
        "g2": 1.0 + 0.1 * jax.random.normal(keys[7], (planes,), jnp.float32),
        "be2": 0.1 * jax.random.normal(keys[8], (planes,), jnp.float32),
        "m2": 0.1 * jax.random.normal(keys[9], (planes,), jnp.float32),
        "v2": 0.5 + jax.random.uniform(keys[10], (planes,), jnp.float32),
        # bn3
        "g3": 1.0 + 0.1 * jax.random.normal(keys[11], (planes * 4,), jnp.float32),
        "be3": 0.1 * jax.random.normal(keys[12], (planes * 4,), jnp.float32),
        "m3": 0.1 * jax.random.normal(keys[13], (planes * 4,), jnp.float32),
        "v3": 0.5 + jax.random.uniform(keys[14], (planes * 4,), jnp.float32),
    }
    x_nchw = jax.random.normal(keys[15], (N, inplanes, H, W), jnp.float32)

    # ---- plain-JAX glue (outside the kernel): layout plumbing + folding -----
    x_flat = jnp.transpose(x_nchw, (0, 2, 3, 1)).reshape(N * HW, inplanes)

    s1, b1 = bn_fold(p["g1"], p["be1"], p["m1"], p["v1"])
    s2, b2 = bn_fold(p["g2"], p["be2"], p["m2"], p["v2"])
    s3, b3 = bn_fold(p["g3"], p["be3"], p["m3"], p["v3"])

    # BN scales folded into the conv weights (f32), then cast to bf16.
    w1 = (p["cw1"][:, :, 0, 0].T * s1[None, :]).astype(jnp.bfloat16)          # (Cin, P)
    w2 = ((jnp.transpose(p["cw2"], (2, 3, 1, 0)).reshape(9 * planes, planes))  # (9P, P)
          * s2[None, :]).astype(jnp.bfloat16)
    w3 = (p["cw3"][:, :, 0, 0].T * s3[None, :]).astype(jnp.bfloat16)          # (P, 4P)

    # Pack the three remaining biases into one (8, Cin) f32 tile.
    bias_pack = jnp.zeros((8, inplanes), jnp.float32)
    bias_pack = bias_pack.at[0, :planes].set(b1)
    bias_pack = bias_pack.at[1, :planes].set(b2)
    bias_pack = bias_pack.at[2, :inplanes].set(b3)

    # One grid step (batch folded into sublanes) on single-TC chips; two
    # "parallel" tiles on dual-TC v7x so both TensorCores are used.
    kind = jax.devices()[0].device_kind.lower()
    n_tiles = 2 if ("7" in kind and N % 2 == 0) else 1
    tile_n = N // n_tiles
    tile_rows = tile_n * HW

    # Precomputed zero-padding border masks for the 9 taps (constants of H, W),
    # repeated for each image in a tile.
    hh = jnp.arange(HW) // W
    ww = jnp.arange(HW) % W
    mlist = []
    for ky in range(3):
        for kx in range(3):
            sh = hh + (ky - 1)
            sw = ww + (kx - 1)
            mlist.append((sh >= 0) & (sh < H) & (sw >= 0) & (sw < W))
    masks = jnp.stack(mlist).astype(jnp.float32)                    # (9, HW)
    masks = jnp.tile(masks[:, None, :], (1, tile_n, 1)).reshape(9, tile_rows)
    masks = jnp.tile(masks[:, :, None], (1, 1, planes))             # (9, rows, P)

    out_flat = bottleneck_pallas(x_flat, w1, w2, w3, bias_pack, masks,
                                 W=W, n_tiles=n_tiles)
    out_flat = jax.block_until_ready(out_flat)
    out_nchw = jnp.transpose(out_flat.reshape(N, H, W, inplanes), (0, 3, 1, 2))

    # Strict check: reference doing the same math (folded bf16 weights, bf16
    # activations on the MXU path, f32 accumulate / bias / residual).
    ref_strict = bottleneck_ref_folded(x_flat, w1, w2, w3, b1, b2, b3,
                                       N=N, H=H, W=W, P=planes)
    err_strict = float(jnp.max(jnp.abs(out_flat - ref_strict)))
    # Loose check: pure-f32 module semantics; gap is only the intentional bf16
    # rounding of the MXU inputs / scale-folded weights.
    ref_f32 = bottleneck_ref(x_nchw, p, jnp.float32)
    err_f32 = float(jnp.max(jnp.abs(out_nchw - ref_f32)))
    assert err_strict < 2e-3, f"mismatch vs bf16-matched reference: {err_strict}"
    assert err_f32 < 1.5e-1, f"mismatch vs f32 reference: {err_f32}"
    print("KERNEL_OK")
</pallas_src>

<mosaic_0001>
module attributes {stable_mosaic.version = 11 : i64} {
  func.func @bottleneck_kernel(%arg0: i32, %arg1: memref<128x128xf32, #tpu.memory_space<vmem>>, %arg2: memref<128x32xbf16, #tpu.memory_space<vmem>>, %arg3: memref<288x32xbf16, #tpu.memory_space<vmem>>, %arg4: memref<32x128xbf16, #tpu.memory_space<vmem>>, %arg5: memref<8x128xf32, #tpu.memory_space<vmem>>, %arg6: memref<9x128x32xf32, #tpu.memory_space<vmem>>, %arg7: memref<128x128xf32, #tpu.memory_space<vmem>>) attributes {dimension_semantics = [#tpu.dimension_semantics<parallel>], iteration_bounds = array<i64: 1>, scalar_prefetch = 0 : i64, scratch_operands = 0 : i64, tpu.core_type = #tpu.core_type<tc>, window_params = [{transform_indices = @transform_0, window_bounds = array<i64: 128, 128>}, {pipeline_mode = #tpu.pipeline_mode<synchronous>, transform_indices = @transform_1, window_bounds = array<i64: 128, 32>}, {pipeline_mode = #tpu.pipeline_mode<synchronous>, transform_indices = @transform_2, window_bounds = array<i64: 288, 32>}, {pipeline_mode = #tpu.pipeline_mode<synchronous>, transform_indices = @transform_3, window_bounds = array<i64: 32, 128>}, {pipeline_mode = #tpu.pipeline_mode<synchronous>, transform_indices = @transform_4, window_bounds = array<i64: 8, 128>}, {pipeline_mode = #tpu.pipeline_mode<synchronous>, transform_indices = @transform_5, window_bounds = array<i64: 9, 128, 32>}, {transform_indices = @transform_6, window_bounds = array<i64: 128, 128>}]} {
    %c0 = arith.constant 0 : index
    %c0_0 = arith.constant 0 : index
    %0 = vector.load %arg1[%c0, %c0_0] : memref<128x128xf32, #tpu.memory_space<vmem>>, vector<128x128xf32>
    %1 = arith.truncf %0 : vector<128x128xf32> to vector<128x128xbf16>
    %c0_1 = arith.constant 0 : index
    %c0_2 = arith.constant 0 : index
    %2 = vector.load %arg2[%c0_1, %c0_2] : memref<128x32xbf16, #tpu.memory_space<vmem>>, vector<128x32xbf16>
    %cst = arith.constant dense<0.000000e+00> : vector<128x32xf32>
    %3 = tpu.matmul %1, %2, %cst {dimension_numbers = #tpu.dot_dimension_numbers<[1], [0], [0], [1], [0, 0, 1, 1], [], []>} : vector<128x128xbf16>, vector<128x32xbf16>, vector<128x32xf32> -> vector<128x32xf32>
    %c0_3 = arith.constant 0 : index
    %c0_4 = arith.constant 0 : index
    %4 = vector.load %arg5[%c0_3, %c0_4] : memref<8x128xf32, #tpu.memory_space<vmem>>, vector<1x32xf32>
    %5 = vector.broadcast %4 : vector<1x32xf32> to vector<128x32xf32>
    %6 = arith.addf %3, %5 : vector<128x32xf32>
    %cst_5 = arith.constant 0.000000e+00 : f32
    %7 = vector.broadcast %cst_5 : f32 to vector<128x32xf32>
    %8 = arith.maximumf %6, %7 : vector<128x32xf32>
    %c9_i32 = arith.constant 9 : i32
    %9 = tpu.dynamic_rotate %8 by %c9_i32 dim 0 : vector<128x32xf32>, i32 -> vector<128x32xf32>
    %c0_6 = arith.constant 0 : index
    %c0_7 = arith.constant 0 : index
    %c0_8 = arith.constant 0 : index
    %10 = vector.load %arg6[%c0_6, %c0_7, %c0_8] : memref<9x128x32xf32, #tpu.memory_space<vmem>>, vector<1x128x32xf32>
    %11 = vector.shape_cast %10 : vector<1x128x32xf32> to vector<128x32xf32>
    %12 = arith.mulf %9, %11 : vector<128x32xf32>
    %13 = arith.truncf %12 : vector<128x32xf32> to vector<128x32xbf16>
    %c8_i32 = arith.constant 8 : i32
    %14 = tpu.dynamic_rotate %8 by %c8_i32 dim 0 : vector<128x32xf32>, i32 -> vector<128x32xf32>
    %c1 = arith.constant 1 : index
    %c0_9 = arith.constant 0 : index
    %c0_10 = arith.constant 0 : index
    %15 = vector.load %arg6[%c1, %c0_9, %c0_10] : memref<9x128x32xf32, #tpu.memory_space<vmem>>, vector<1x128x32xf32>
    %16 = vector.shape_cast %15 : vector<1x128x32xf32> to vector<128x32xf32>
    %17 = arith.mulf %14, %16 : vector<128x32xf32>
    %18 = arith.truncf %17 : vector<128x32xf32> to vector<128x32xbf16>
    %c7_i32 = arith.constant 7 : i32
    %19 = tpu.dynamic_rotate %8 by %c7_i32 dim 0 : vector<128x32xf32>, i32 -> vector<128x32xf32>
    %c2 = arith.constant 2 : index
    %c0_11 = arith.constant 0 : index
    %c0_12 = arith.constant 0 : index
    %20 = vector.load %arg6[%c2, %c0_11, %c0_12] : memref<9x128x32xf32, #tpu.memory_space<vmem>>, vector<1x128x32xf32>
    %21 = vector.shape_cast %20 : vector<1x128x32xf32> to vector<128x32xf32>
    %22 = arith.mulf %19, %21 : vector<128x32xf32>
    %23 = arith.truncf %22 : vector<128x32xf32> to vector<128x32xbf16>
    %24 = tpu.concatenate %13, %18, %23 in 1 : vector<128x32xbf16>, vector<128x32xbf16>, vector<128x32xbf16> -> vector<128x96xbf16>
    %c0_13 = arith.constant 0 : index
    %c0_14 = arith.constant 0 : index
    %25 = vector.load %arg3[%c0_13, %c0_14] : memref<288x32xbf16, #tpu.memory_space<vmem>>, vector<96x32xbf16>
    %cst_15 = arith.constant dense<0.000000e+00> : vector<128x32xf32>
    %26 = tpu.matmul %24, %25, %cst_15 {dimension_numbers = #tpu.dot_dimension_numbers<[1], [0], [0], [1], [0, 0, 1, 1], [], []>} : vector<128x96xbf16>, vector<96x32xbf16>, vector<128x32xf32> -> vector<128x32xf32>
    %c1_i32 = arith.constant 1 : i32
    %27 = tpu.dynamic_rotate %8 by %c1_i32 dim 0 : vector<128x32xf32>, i32 -> vector<128x32xf32>
    %c3 = arith.constant 3 : index
    %c0_16 = arith.constant 0 : index
    %c0_17 = arith.constant 0 : index
    %28 = vector.load %arg6[%c3, %c0_16, %c0_17] : memref<9x128x32xf32, #tpu.memory_space<vmem>>, vector<1x128x32xf32>
    %29 = vector.shape_cast %28 : vector<1x128x32xf32> to vector<128x32xf32>
    %30 = arith.mulf %27, %29 : vector<128x32xf32>
    %31 = arith.truncf %30 : vector<128x32xf32> to vector<128x32xbf16>
    %32 = arith.truncf %8 : vector<128x32xf32> to vector<128x32xbf16>
    %c127_i32 = arith.constant 127 : i32
    %33 = tpu.dynamic_rotate %8 by %c127_i32 dim 0 : vector<128x32xf32>, i32 -> vector<128x32xf32>
    %c5 = arith.constant 5 : index
    %c0_18 = arith.constant 0 : index
    %c0_19 = arith.constant 0 : index
    %34 = vector.load %arg6[%c5, %c0_18, %c0_19] : memref<9x128x32xf32, #tpu.memory_space<vmem>>, vector<1x128x32xf32>
    %35 = vector.shape_cast %34 : vector<1x128x32xf32> to vector<128x32xf32>
    %36 = arith.mulf %33, %35 : vector<128x32xf32>
    %37 = arith.truncf %36 : vector<128x32xf32> to vector<128x32xbf16>
    %38 = tpu.concatenate %31, %32, %37 in 1 : vector<128x32xbf16>, vector<128x32xbf16>, vector<128x32xbf16> -> vector<128x96xbf16>
    %c96 = arith.constant 96 : index
    %c0_20 = arith.constant 0 : index
    %39 = vector.load %arg3[%c96, %c0_20] : memref<288x32xbf16, #tpu.memory_space<vmem>>, vector<96x32xbf16>
    %cst_21 = arith.constant dense<0.000000e+00> : vector<128x32xf32>
    %40 = tpu.matmul %38, %39, %cst_21 {dimension_numbers = #tpu.dot_dimension_numbers<[1], [0], [0], [1], [0, 0, 1, 1], [], []>} : vector<128x96xbf16>, vector<96x32xbf16>, vector<128x32xf32> -> vector<128x32xf32>
    %41 = arith.addf %26, %40 : vector<128x32xf32>
    %c121_i32 = arith.constant 121 : i32
    %42 = tpu.dynamic_rotate %8 by %c121_i32 dim 0 : vector<128x32xf32>, i32 -> vector<128x32xf32>
    %c6 = arith.constant 6 : index
    %c0_22 = arith.constant 0 : index
    %c0_23 = arith.constant 0 : index
    %43 = vector.load %arg6[%c6, %c0_22, %c0_23] : memref<9x128x32xf32, #tpu.memory_space<vmem>>, vector<1x128x32xf32>
    %44 = vector.shape_cast %43 : vector<1x128x32xf32> to vector<128x32xf32>
    %45 = arith.mulf %42, %44 : vector<128x32xf32>
    %46 = arith.truncf %45 : vector<128x32xf32> to vector<128x32xbf16>
    %c120_i32 = arith.constant 120 : i32
    %47 = tpu.dynamic_rotate %8 by %c120_i32 dim 0 : vector<128x32xf32>, i32 -> vector<128x32xf32>
    %c7 = arith.constant 7 : index
    %c0_24 = arith.constant 0 : index
    %c0_25 = arith.constant 0 : index
    %48 = vector.load %arg6[%c7, %c0_24, %c0_25] : memref<9x128x32xf32, #tpu.memory_space<vmem>>, vector<1x128x32xf32>
    %49 = vector.shape_cast %48 : vector<1x128x32xf32> to vector<128x32xf32>
    %50 = arith.mulf %47, %49 : vector<128x32xf32>
    %51 = arith.truncf %50 : vector<128x32xf32> to vector<128x32xbf16>
    %c119_i32 = arith.constant 119 : i32
    %52 = tpu.dynamic_rotate %8 by %c119_i32 dim 0 : vector<128x32xf32>, i32 -> vector<128x32xf32>
    %c8 = arith.constant 8 : index
    %c0_26 = arith.constant 0 : index
    %c0_27 = arith.constant 0 : index
    %53 = vector.load %arg6[%c8, %c0_26, %c0_27] : memref<9x128x32xf32, #tpu.memory_space<vmem>>, vector<1x128x32xf32>
    %54 = vector.shape_cast %53 : vector<1x128x32xf32> to vector<128x32xf32>
    %55 = arith.mulf %52, %54 : vector<128x32xf32>
    %56 = arith.truncf %55 : vector<128x32xf32> to vector<128x32xbf16>
    %57 = tpu.concatenate %46, %51, %56 in 1 : vector<128x32xbf16>, vector<128x32xbf16>, vector<128x32xbf16> -> vector<128x96xbf16>
    %c192 = arith.constant 192 : index
    %c0_28 = arith.constant 0 : index
    %58 = vector.load %arg3[%c192, %c0_28] : memref<288x32xbf16, #tpu.memory_space<vmem>>, vector<96x32xbf16>
    %cst_29 = arith.constant dense<0.000000e+00> : vector<128x32xf32>
    %59 = tpu.matmul %57, %58, %cst_29 {dimension_numbers = #tpu.dot_dimension_numbers<[1], [0], [0], [1], [0, 0, 1, 1], [], []>} : vector<128x96xbf16>, vector<96x32xbf16>, vector<128x32xf32> -> vector<128x32xf32>
    %60 = arith.addf %41, %59 : vector<128x32xf32>
    %c1_30 = arith.constant 1 : index
    %c0_31 = arith.constant 0 : index
    %61 = vector.load %arg5[%c1_30, %c0_31] : memref<8x128xf32, #tpu.memory_space<vmem>>, vector<1x32xf32>
    %62 = vector.broadcast %61 : vector<1x32xf32> to vector<128x32xf32>
    %63 = arith.addf %60, %62 : vector<128x32xf32>
    %cst_32 = arith.constant 0.000000e+00 : f32
    %64 = vector.broadcast %cst_32 : f32 to vector<128x32xf32>
    %65 = arith.maximumf %63, %64 : vector<128x32xf32>
    %66 = arith.truncf %65 : vector<128x32xf32> to vector<128x32xbf16>
    %c0_33 = arith.constant 0 : index
    %c0_34 = arith.constant 0 : index
    %67 = vector.load %arg4[%c0_33, %c0_34] : memref<32x128xbf16, #tpu.memory_space<vmem>>, vector<32x128xbf16>
    %cst_35 = arith.constant dense<0.000000e+00> : vector<128x128xf32>
    %68 = tpu.matmul %66, %67, %cst_35 {dimension_numbers = #tpu.dot_dimension_numbers<[1], [0], [0], [1], [0, 0, 1, 1], [], []>} : vector<128x32xbf16>, vector<32x128xbf16>, vector<128x128xf32> -> vector<128x128xf32>
    %c2_36 = arith.constant 2 : index
    %c0_37 = arith.constant 0 : index
    %69 = vector.load %arg5[%c2_36, %c0_37] : memref<8x128xf32, #tpu.memory_space<vmem>>, vector<1x128xf32>
    %70 = vector.broadcast %69 : vector<1x128xf32> to vector<128x128xf32>
    %71 = arith.addf %68, %70 : vector<128x128xf32>
    %c0_38 = arith.constant 0 : index
    %c0_39 = arith.constant 0 : index
    %72 = vector.load %arg1[%c0_38, %c0_39] : memref<128x128xf32, #tpu.memory_space<vmem>>, vector<128x128xf32>
    %73 = arith.addf %71, %72 : vector<128x128xf32>
    %cst_40 = arith.constant 0.000000e+00 : f32
    %74 = vector.broadcast %cst_40 : f32 to vector<128x128xf32>
    %75 = arith.maximumf %73, %74 : vector<128x128xf32>
    %c0_41 = arith.constant 0 : index
    %c0_42 = arith.constant 0 : index
    %76 = vector.load %arg7[%c0_41, %c0_42] : memref<128x128xf32, #tpu.memory_space<vmem>>, vector<128x128xf32>
    tpu.vector_store %arg7[%c0_41, %c0_42], %75 {strides = array<i32>} : memref<128x128xf32, #tpu.memory_space<vmem>>, vector<128x128xf32>,
    return
  }
  func.func @transform_0(%arg0: i32) -> (i32, i32) {
    %c0_i32 = arith.constant 0 : i32
    %c0_i32_0 = arith.constant 0 : i32
    return %arg0, %c0_i32 : i32, i32
  }
  func.func @transform_1(%arg0: i32) -> (i32, i32) {
    %c0_i32 = arith.constant 0 : i32
    %c0_i32_0 = arith.constant 0 : i32
    %c0_i32_1 = arith.constant 0 : i32
    return %c0_i32, %c0_i32_0 : i32, i32
  }
  func.func @transform_2(%arg0: i32) -> (i32, i32) {
    %c0_i32 = arith.constant 0 : i32
    %c0_i32_0 = arith.constant 0 : i32
    %c0_i32_1 = arith.constant 0 : i32
    return %c0_i32, %c0_i32_0 : i32, i32
  }
  func.func @transform_3(%arg0: i32) -> (i32, i32) {
    %c0_i32 = arith.constant 0 : i32
    %c0_i32_0 = arith.constant 0 : i32
    %c0_i32_1 = arith.constant 0 : i32
    return %c0_i32, %c0_i32_0 : i32, i32
  }
  func.func @transform_4(%arg0: i32) -> (i32, i32) {
    %c0_i32 = arith.constant 0 : i32
    %c0_i32_0 = arith.constant 0 : i32
    %c0_i32_1 = arith.constant 0 : i32
    return %c0_i32, %c0_i32_0 : i32, i32
  }
  func.func @transform_5(%arg0: i32) -> (i32, i32, i32) {
    %c0_i32 = arith.constant 0 : i32
    %c0_i32_0 = arith.constant 0 : i32
    %c0_i32_1 = arith.constant 0 : i32
    %c0_i32_2 = arith.constant 0 : i32
    return %c0_i32, %c0_i32_0, %c0_i32_1 : i32, i32, i32
  }
  func.func @transform_6(%arg0: i32) -> (i32, i32) {
    %c0_i32 = arith.constant 0 : i32
    %c0_i32_0 = arith.constant 0 : i32
    return %arg0, %c0_i32 : i32, i32
  }
}

</mosaic_0001>

<bundles_post_ra>
// kernel: tpu_custom_call.1
= control target key start
LH: loop header
LB: loop body
LE: loop exit
PB: predicated region body
PF: predicated region fallthrough
CT: control target
= control target key end

     0   :  { %s3862_s0 = inlined_call_operand.vmem [shape: f32[128,128], index: 0, kind: input, shape index: {}]   ;;  %s3863_s1 = inlined_call_operand.vmem [shape: bf16[128,32], index: 1, kind: input, shape index: {}]   ;;  %s3864_s2 = inlined_call_operand.vmem [shape: bf16[288,32], index: 2, kind: input, shape index: {}]   ;;  %s3865_s3 = inlined_call_operand.vmem [shape: bf16[32,128], index: 3, kind: input, shape index: {}]   ;;  %s3866_s4 = inlined_call_operand.vmem [shape: f32[8,128], index: 4, kind: input, shape index: {}]   ;;  %s3867_s5 = inlined_call_operand.vmem [shape: f32[9,128,32], index: 5, kind: input, shape index: {}]   ;;  %s3868_s6 = inlined_call_operand.hbm [shape: f32[128,128], index: 6, kind: output, shape index: {}]  }
   0x1   :  { %v2079_v0 = vld [vmem:[%s3863_s1] sm:$0xff]   ;;  %v2080_v1 = vld [vmem:[%s3863_s1 + $0x8] sm:$0xff]   ;;  %v2081_v2 = vld [vmem:[%s3863_s1 + $0x10] sm:$0xff]  }
   0x2   :  { %1894 = vmatprep.subr.bf16.mxu0 %v2079_v0  ;;  %v2082_v3 = vld [vmem:[%s3863_s1 + $0x18] sm:$0xff]   ;;  %v25_v4 = vld [vmem:[%s3862_s0] sm:$0xff]  ;;  %v26_v5 = vld [vmem:[%s3862_s0 + $0x8] sm:$0xff] }
   0x3   :  { %1895 = vmatpush3.bf16.msra.mxu0 %v2079_v0  ;;  %v41_v6 = vpack.c.bf16 %v26_v5, %v25_v4  ;;  %v2083_v7 = vld [vmem:[%s3863_s1 + $0x20] sm:$0xff]   ;;  %v2084_v8 = vld [vmem:[%s3863_s1 + $0x28] sm:$0xff]   ;;  %v2085_v9 = vld [vmem:[%s3863_s1 + $0x30] sm:$0xff]  }
   0x4   :  { %1896 = vmatprep.subr.bf16.mxu0 %v2080_v1  ;;  %v2086_v10 = vld [vmem:[%s3863_s1 + $0x38] sm:$0xff]  }
   0x5   :  { %1910 = vmatprep.mubr.bf16.mxu0 %v41_v6 }
   0x7   :  { %1897 = vmatpush3.bf16.msra.mxu0 %v2080_v1 }
   0x8   :  { %1898 = vmatprep.subr.bf16.mxu0 %v2081_v2 }
   0xb   :  { %1899 = vmatpush3.bf16.msra.mxu0 %v2081_v2 }
   0xc   :  { %1900 = vmatprep.subr.bf16.mxu0 %v2082_v3 }
   0xf   :  { %1901 = vmatpush3.bf16.msra.mxu0 %v2082_v3 }
  0x10   :  { %1902 = vmatprep.subr.bf16.mxu0 %v2083_v7 }
  0x13   :  { %1903 = vmatpush3.bf16.msra.mxu0 %v2083_v7 }
  0x14   :  { %1904 = vmatprep.subr.bf16.mxu0 %v2084_v8 }
  0x17   :  { %1905 = vmatpush3.bf16.msra.mxu0 %v2084_v8 }
  0x18   :  { %1906 = vmatprep.subr.bf16.mxu0 %v2085_v9 }
  0x19   :  { %11 = vsyncpa [#allocation3], 0  ;;  %v27_v11 = vld [vmem:[%s3862_s0 + $0x10] sm:$0xff]  ;;  %v28_v12 = vld [vmem:[%s3862_s0 + $0x18] sm:$0xff]  ;;  %v247_v35 = vlaneseq  ;;  %s2147_s23 = smov 32   ;;  %s2148_s24 = smov 64  }
  0x1a   :  { %v29_v13 = vld [vmem:[%s3862_s0 + $0x20] sm:$0xff]  ;;  %v30_v14 = vld [vmem:[%s3862_s0 + $0x28] sm:$0xff]  ;;  %v42_v15 = vpack.c.bf16 %v28_v12, %v27_v11  ;;  %v31_v17 = vld [vmem:[%s3862_s0 + $0x30] sm:$0xff]  ;;  %vm469_vm2 = vcmask 261120   ;;  %vm494_vm3 = vcmask 523264   ;;  %vm749_vm4 = vcmask 785408  }
  0x1b   :  { %1907 = vmatpush3.bf16.msra.mxu0 %v2085_v9  ;;  %v43_v16 = vpack.c.bf16 %v30_v14, %v29_v13  ;;  %v32_v18 = vld [vmem:[%s3862_s0 + $0x38] sm:$0xff]  ;;  %v33_v19 = vld [vmem:[%s3862_s0 + $0x40] sm:$0xff]  ;;  %v34_v20 = vld [vmem:[%s3862_s0 + $0x48] sm:$0xff]  ;;  %v2275_v42 = vshrl.u32 %v247_v35, 7  ;;  %s2149_s13 = smov [#allocation2]  }
  0x1c   :  { %1908 = vmatprep.subr.bf16.mxu0 %v2086_v10  ;;  %v44_v21 = vpack.c.bf16 %v32_v18, %v31_v17  ;;  %v45_v22 = vpack.c.bf16 %v34_v20, %v33_v19  ;;  %v35_v23 = vld [vmem:[%s3862_s0 + $0x50] sm:$0xff]  ;;  %v36_v24 = vld [vmem:[%s3862_s0 + $0x58] sm:$0xff]  ;;  %v37_v25 = vld [vmem:[%s3862_s0 + $0x60] sm:$0xff]  ;;  %s1640_s14 = sshll.u32 %s2149_s13, 4  ;;  %s1641_s14 = int_to_ptr.vmem [resolvable:$true] %s1640_s14 }
  0x1d   :  { %v38_v26 = vld [vmem:[%s3862_s0 + $0x68] sm:$0xff]  ;;  %v46_v27 = vpack.c.bf16 %v36_v24, %v35_v23  ;;  %v39_v29 = vld [vmem:[%s3862_s0 + $0x70] sm:$0xff]  ;;  %v40_v30 = vld [vmem:[%s3862_s0 + $0x78] sm:$0xff]  ;;  %vm363_vm0 = vcmp.lt.s32.totalorder %v2275_v42, 7  ;;  %vm249_vm1 = vcmp.lt.s32.totalorder %v2275_v42, 1  ;;  %s2123_s16 = scalar_lea.vmem %s1641_s14, 2048  ;;  %p2128_p1 = scmp.lt.s32.totalorder %s1641_s14, %s1641_s14 }
  0x1e   :  { %v47_v28 = vpack.c.bf16 %v38_v26, %v37_v25  ;;  %v48_v31 = vpack.c.bf16 %v40_v30, %v39_v29  ;;  %v2087_v32 = vld [vmem:[%s3864_s2 + $0x30] sm:$0xff]   ;;  %v2088_v33 = vld [vmem:[%s3864_s2 + $0x38] sm:$0xff]   ;;  %v2268_v34 = vld [vmem:[%s3866_s4] ss:$0 sm:$0xff]  ;;  %p2124_p0 = scmp.ne.s32.totalorder %s1641_s14, %s2123_s16  ;;  %p2129_p2 = scmp.lt.s32.totalorder %s2123_s16, %s2123_s16 }
  0x1f   :  { %1909 = vmatpush3.bf16.msra.mxu0 %v2086_v10  ;;  %2030 = vmatprep.subr.bf16.mxu1 %v2087_v32  ;;  %v2089_v36 = vld [vmem:[%s3864_s2 + $0x40] sm:$0xff]   ;;  %v1663_v48 = vld [vmem:[%s3867_s5 + $0x98] sm:$0xff]  ;;  %v2090_v49 = vld [vmem:[%s3864_s2 + $0x48] sm:$0xff]  }
  0x20   :  { %1926 = vmatprep.subr.bf16.mxu0 %v2087_v32  ;;  %2036 = vmatpush3.bf16.msra.mxu1 %v2087_v32  ;;  %v1662_v51 = vld [vmem:[%s3867_s5 + $0x90] sm:$0xff]  ;;  %v1768_v52 = vld [vmem:[%s3867_s5 + $0x380] sm:$0xff]  ;;  %v1769_v53 = vld [vmem:[%s3867_s5 + $0x388] sm:$0xff]  ;;  %p2130_p3 = por %p2129_p2, %p2128_p1 }
  0x21   :  { %2031 = vmatprep.subr.bf16.mxu1 %v2088_v33  ;;  %v1679_v59 = vld [vmem:[%s3867_s5 + $0x118] sm:$0xff]  ;;  %v1678_v63 = vld [vmem:[%s3867_s5 + $0x110] sm:$0xff]  ;;  %v1664_v19 = vld [vmem:[%s3867_s5 + $0xa0] sm:$0xff] }
  0x22   :  { %1911 = vmatmul.mubr.bf16.vlgmr.msra.gmra.mrb[0].mxu0 %v42_v15  ;;  %v2091_v7 = vld [vmem:[%s3864_s2 + $0x50] sm:$0xff]   ;;  %v279_v42 = vld [vmem:[%s3867_s5 + $0x68] sm:$0xff]  ;;  %p2131_p4 = pnand %p2130_p3, %p2124_p0 }
  0x23   :  { %1914 = vmatprep.mubr.bf16.mxu0 %v43_v16  ;;  %1927 = vmatpush3.bf16.msra.mxu0 %v2087_v32  ;;  %v1661_v16 = vld [vmem:[%s3867_s5 + $0x88] sm:$0xff] }
  0x24   :  { %1928 = vmatprep.subr.bf16.mxu0 %v2088_v33  ;;  %2037 = vmatpush3.bf16.msra.mxu1 %v2088_v33 }
  0x25   :  { %2032 = vmatprep.subr.bf16.mxu1 %v2089_v36 }
  0x27   :  { %1929 = vmatpush3.bf16.msra.mxu0 %v2088_v33  ;;  %v2092_v33 = vld [vmem:[%s3864_s2 + $0x58] sm:$0xff]  }
  0x28   :  { %1930 = vmatprep.subr.bf16.mxu0 %v2089_v36  ;;  %2038 = vmatpush3.bf16.msra.mxu1 %v2089_v36 }
  0x29   :  { %2033 = vmatprep.subr.bf16.mxu1 %v2090_v49 }
  0x2a   :  { %1915 = vmatmul.mubr.bf16.gmra.mrb[4].mxu0 %v44_v21 }
  0x2b   :  { %1918 = vmatprep.mubr.bf16.mxu0 %v45_v22  ;;  %1931 = vmatpush3.bf16.msra.mxu0 %v2089_v36  ;;  %v1665_v22 = vld [vmem:[%s3867_s5 + $0xa8] sm:$0xff] }
  0x2c   :  { %1932 = vmatprep.subr.bf16.mxu0 %v2090_v49  ;;  %2039 = vmatpush3.bf16.msra.mxu1 %v2090_v49 }
  0x2d   :  { %2034 = vmatprep.subr.bf16.mxu1 %v2091_v7 }
  0x2f   :  { %1933 = vmatpush3.bf16.msra.mxu0 %v2090_v49 }
  0x30   :  { %1934 = vmatprep.subr.bf16.mxu0 %v2091_v7  ;;  %2040 = vmatpush3.bf16.msra.mxu1 %v2091_v7 }
  0x31   :  { %2035 = vmatprep.subr.bf16.mxu1 %v2092_v33 }
  0x32   :  { %1919 = vmatmul.mubr.bf16.gmra.mrb[8].mxu0 %v46_v27 }
  0x33   :  { %1922 = vmatprep.mubr.bf16.mxu0 %v47_v28  ;;  %v1666_v28 = vld [vmem:[%s3867_s5 + $0xb0] sm:$0xff]  ;;  %1935 = vmatpush3.bf16.msra.mxu0 %v2091_v7 }
  0x34   :  { %1936 = vmatprep.subr.bf16.mxu0 %v2092_v33  ;;  %2041 = vmatpush3.bf16.msra.mxu1 %v2092_v33 }
  0x37   :  { %1937 = vmatpush3.bf16.msra.mxu0 %v2092_v33  ;;  %v1714_v33 = vld [vmem:[%s3867_s5 + $0x2b0] sm:$0xff] }
  0x3a   :  { %1923 = vmatmul.mubr.bf16.gmra.mrb[12].mxu0 %v48_v31 }
  0xf5   :  { %v1912_v37 = vpop.f32.mrb[0].mxu0 }
  0xf6   :  { %v161_v38 = vadd.f32 %v1912_v37, %v2268_v34  ;;  %v152_v39 = vpop.f32.mrb[1].mxu0 }
  0xf7   :  { %v153_v40 = vadd.f32 %v2268_v34, %v152_v39  ;;  %v1913_v41 = vpop.f32.mrb[2].mxu0 }
  0xf8   :  { %v2277_v43 = vmax.f32 %v161_v38, 0.0  ;;  %v164_v44 = vadd.f32 %v1913_v41, %v2268_v34  ;;  %v155_v45 = vpop.f32.mrb[3].mxu0  ;;  %v1667_v38 = vld [vmem:[%s3867_s5 + $0xb8] sm:$0xff] }
  0xf9   :  { %v2280_v46 = vmax.f32 %v153_v40, 0.0  ;;  %v156_v47 = vadd.f32 %v2268_v34, %v155_v45  ;;  %v1681_v40 = vld [vmem:[%s3867_s5 + $0x128] sm:$0xff] }
  0xfa   :  { %3927 = vst [vmem:[#allocation5_spill] sm:$0xff] %v2277_v43  ;;  %v2289_v50 = vmax.f32 %v164_v44, 0.0  ;;  %v326_v55 = vmul.f32 %v1663_v48, %v2277_v43  ;;  %v349_v57 = vrot.slane %v2277_v43, 1  ;;  %v2319_v1 = vmul.f32 %v1769_v53, %v2277_v43  ;;  %v1713_v48 = vld [vmem:[%s3867_s5 + $0x2a8] sm:$0xff]  ;;  %v1708_v43 = vld [vmem:[%s3867_s5 + $0x280] sm:$0xff] }
  0xfb   :  { %v2300_v54 = vmax.f32 %v156_v47, 0.0  ;;  %v347_v56 = vrot.slane %v2280_v46, 1  ;;  %v2383_v31 = vmul.f32 %v1661_v16, %v2280_v46  ;;  %v1712_v47 = vld [vmem:[%s3867_s5 + $0x2a0] sm:$0xff] }
  0xfc   :  { %v350_v58 = vrot.slane %v2289_v50, 1  ;;  %3930 = vst [vmem:[#allocation8_spill] sm:$0xff] %v2319_v1  ;;  %v2386_v32 = vmul.f32 %v1664_v19, %v2289_v50  ;;  %v1687_v1 = vld [vmem:[%s3867_s5 + $0x158] sm:$0xff] }
  0xfd   :  { %3928 = vst [vmem:[#allocation6_spill] sm:$0xff] %v2300_v54  ;;  %v1916_v60 = vpop.f32.mrb[4].mxu0  ;;  %v325_v61 = vmul.f32 %v1662_v51, %v2300_v54  ;;  %v348_v62 = vrot.slane %v2300_v54, 1  ;;  %v2316_v0 = vmul.f32 %v1768_v52, %v2300_v54  ;;  %v1684_v54 = vld [vmem:[%s3867_s5 + $0x140] sm:$0xff] }
  0xfe   :  { %v177_v2 = vadd.f32 %v1916_v60, %v2268_v34  ;;  %v168_v3 = vpop.f32.mrb[5].mxu0  ;;  %v2326_v4 = vsel %vm363_vm0, %v349_v57, %v350_v58 }
  0xff   :  { %3929 = vst [vmem:[#allocation7_spill] sm:$0xff] %v2316_v0  ;;  %v169_v8 = vadd.f32 %v2268_v34, %v168_v3  ;;  %v1917_v9 = vpop.f32.mrb[6].mxu0  ;;  %v340_v10 = vpack.c.bf16 %v326_v55, %v325_v61  ;;  %v2338_v11 = vsel %vm363_vm0, %v348_v62, %v349_v57  ;;  %v2341_v12 = vmul.f32 %v1679_v59, %v2326_v4  ;;  %v2451_v3 = vld [vmem:[%s3864_s2] sm:$0xff]  }
 0x100   :  { %v2343_v13 = vmax.f32 %v177_v2, 0.0  ;;  %v180_v14 = vadd.f32 %v1917_v9, %v2268_v34  ;;  %v171_v15 = vpop.f32.mrb[7].mxu0  ;;  %v2350_v17 = vmul.f32 %v1678_v63, %v2338_v11  ;;  %v2356_v18 = vsel %vm363_vm0, %v347_v56, %v348_v62  ;;  %v1677_v63 = vld [vmem:[%s3867_s5 + $0x108] sm:$0xff]  ;;  %3931 = vst [vmem:[#allocation9_spill] sm:$0xff] %v2451_v3  ;;  %1954 = vmatprep.subr.bf16.mxu1 %v2451_v3  ;;  %v1668_v3 = vld [vmem:[%s3867_s5 + $0xc0] sm:$0xff] }
 0x101   :  { %v2361_v20 = vmax.f32 %v169_v8, 0.0  ;;  %v172_v21 = vadd.f32 %v2268_v34, %v171_v15  ;;  %431 = vrot.lane.b32.xlu1 %v340_v10, %s2147_s23  ;;  %v1683_v15 = vld [vmem:[%s3867_s5 + $0x138] sm:$0xff] }
 0x102   :  { %v2372_v26 = vmax.f32 %v180_v14, 0.0  ;;  %v353_v36 = vrot.slane %v2343_v13, 1  ;;  %v2443_v2 = vmul.f32 %v1667_v38, %v2343_v13 }
 0x103   :  { %v2379_v29 = vmax.f32 %v172_v21, 0.0  ;;  %v351_v30 = vrot.slane %v2361_v20, 1  ;;  %v2399_v39 = vmul.f32 %v1665_v22, %v2361_v20  ;;  %v1676_v22 = vld [vmem:[%s3867_s5 + $0x100] sm:$0xff] }
 0x104   :  { %v567_v35 = vpack.c.bf16 %v2372_v26, %v2343_v13  ;;  %v354_v37 = vrot.slane %v2372_v26, 1 }
 0x105   :  { %v1920_v41 = vpop.f32.mrb[8].mxu0  ;;  %v566_v44 = vpack.c.bf16 %v2379_v29, %v2361_v20  ;;  %v352_v45 = vrot.slane %v2379_v29, 1  ;;  %v2412_v49 = vmul.f32 %v1666_v28, %v2379_v29  ;;  %v2428_v57 = vsel %vm363_vm0, %v350_v58, %v351_v30  ;;  %v1682_v58 = vld [vmem:[%s3867_s5 + $0x130] sm:$0xff] }
 0x106   :  { %v193_v51 = vadd.f32 %v1920_v41, %v2268_v34  ;;  %627 = vrot.lane.b32.xlu0 %v567_v35, %s2147_s23  ;;  %v184_v52 = vpop.f32.mrb[9].mxu0  ;;  %v2420_v53 = vsel %vm363_vm0, %v353_v36, %v354_v37  ;;  %v2475_v35 = vmul.f32 %v1677_v63, %v2356_v18 }
 0x107   :  { %v185_v59 = vadd.f32 %v2268_v34, %v184_v52  ;;  %v1921_v60 = vpop.f32.mrb[10].mxu0  ;;  %v2433_v61 = vsel %vm363_vm0, %v352_v45, %v353_v36  ;;  %v2437_v62 = vsel %vm363_vm0, %v351_v30, %v352_v45 }
 0x108   :  { %v2453_v7 = vmax.f32 %v193_v51, 0.0  ;;  %v196_v8 = vadd.f32 %v1921_v60, %v2268_v34  ;;  %v187_v9 = vpop.f32.mrb[11].mxu0  ;;  %v593_v10 = vmul.f32 %v1712_v47, %v2437_v62  ;;  %v594_v14 = vmul.f32 %v1713_v48, %v2433_v61  ;;  %v1680_v60 = vld [vmem:[%s3867_s5 + $0x120] sm:$0xff] }
 0x109   :  { %v2462_v19 = vmax.f32 %v185_v59, 0.0  ;;  %v188_v21 = vadd.f32 %v2268_v34, %v187_v9  ;;  %v2478_v36 = vmul.f32 %v1682_v58, %v2433_v61  ;;  %v2488_v47 = vmul.f32 %v1683_v15, %v2420_v53  ;;  %v1716_v9 = vld [vmem:[%s3867_s5 + $0x2c0] sm:$0xff] }
 0x10a   :  { %v2468_v28 = vmax.f32 %v196_v8, 0.0  ;;  %625 = vrot.lane.b32.xlu0 %v566_v44, %s2147_s23  ;;  %v607_v30 = vpack.c.bf16 %v594_v14, %v593_v10  ;;  %v1715_v44 = vld [vmem:[%s3867_s5 + $0x2b8] sm:$0xff]  ;;  %v357_v52 = vrot.slane %v2453_v7, 1  ;;  %v1717_v10 = vld [vmem:[%s3867_s5 + $0x2c8] sm:$0xff]  ;;  %v595_v15 = vmul.f32 %v1714_v33, %v2420_v53 }
 0x10b   :  { %v2481_v41 = vmax.f32 %v188_v21, 0.0  ;;  %v355_v45 = vrot.slane %v2462_v19, 1 }
 0x10c   :  { %649 = vrot.lane.b32.xlu1 %v607_v30, %s2148_s24  ;;  %v569_v51 = vpack.c.bf16 %v2468_v28, %v2453_v7  ;;  %v358_v59 = vrot.slane %v2468_v28, 1 }
 0x10d   :  { %v1924_v63 = vpop.f32.mrb[12].mxu0  ;;  %v568_v58 = vpack.c.bf16 %v2481_v41, %v2462_v19  ;;  %v356_v8 = vrot.slane %v2481_v41, 1  ;;  %v2512_v14 = vsel %vm363_vm0, %v354_v37, %v355_v45 }
 0x10e   :  { %v209_v21 = vadd.f32 %v1924_v63, %v2268_v34  ;;  %v200_v30 = vpop.f32.mrb[13].mxu0  ;;  %v596_v6 = vmul.f32 %v1715_v44, %v2512_v14  ;;  %v2519_v5 = vsel %vm363_vm0, %v357_v52, %v358_v59  ;;  %v2537_v63 = vmul.f32 %v1680_v60, %v2428_v57  ;;  %v1660_v60 = vld [vmem:[%s3867_s5 + $0x80] sm:$0xff] }
 0x10f   :  { %v201_v37 = vadd.f32 %v2268_v34, %v200_v30  ;;  %v1925_v48 = vpop.f32.mrb[14].mxu0  ;;  %629 = vrot.lane.b32.xlu0 %v568_v58, %s2147_s23  ;;  %v2530_v33 = vsel %vm363_vm0, %v356_v8, %v357_v52  ;;  %v2534_v44 = vsel %vm363_vm0, %v355_v45, %v356_v8  ;;  %v2552_v8 = vmul.f32 %v1681_v40, %v2437_v62  ;;  %v1719_v40 = vld [vmem:[%s3867_s5 + $0x2d8] sm:$0xff] }
 0x110   :  { %3932 = vst [vmem:[#allocation10_spill] sm:$0xff] %v2537_v63  ;;  %v2539_v38 = vmax.f32 %v209_v21, 0.0  ;;  %v212_v25 = vadd.f32 %v1925_v48, %v2268_v34  ;;  %v203_v16 = vpop.f32.mrb[15].mxu0  ;;  %631 = vrot.lane.b32.xlu1 %v569_v51, %s2147_s23  ;;  %v597_v58 = vmul.f32 %v1716_v9, %v2534_v44  ;;  %v598_v30 = vmul.f32 %v1717_v10, %v2530_v33  ;;  %v1718_v9 = vld [vmem:[%s3867_s5 + $0x2d0] sm:$0xff]  ;;  %v1720_v48 = vld [vmem:[%s3867_s5 + $0x2e0] sm:$0xff]  ;;  %v1709_v63 = vld [vmem:[%s3867_s5 + $0x288] sm:$0xff] }
 0x111   :  { %v2545_v52 = vmax.f32 %v201_v37, 0.0  ;;  %v204_v24 = vadd.f32 %v2268_v34, %v203_v16  ;;  %v608_v45 = vpack.c.bf16 %v596_v6, %v595_v15  ;;  %v1723_v34 = vld [vmem:[%s3867_s5 + $0x2f8] sm:$0xff]  ;;  %v599_v15 = vmul.f32 %v1718_v9, %v2519_v5 }
 0x112   :  { %v2555_v21 = vmax.f32 %v212_v25, 0.0  ;;  %v609_v51 = vpack.c.bf16 %v598_v30, %v597_v58  ;;  %v361_v10 = vrot.slane %v2539_v38, 1  ;;  %v1722_v30 = vld [vmem:[%s3867_s5 + $0x2f0] sm:$0xff]  ;;  %v1721_v25 = vld [vmem:[%s3867_s5 + $0x2e8] sm:$0xff] }
 0x113   :  { %v2562_v6 = vmax.f32 %v204_v24, 0.0  ;;  %v359_v16 = vrot.slane %v2545_v52, 1 }
 0x114   :  { %653 = vrot.lane.b32.xlu0 %v609_v51, %s2148_s24  ;;  %651 = vrot.lane.b32.xlu1 %v608_v45, %s2148_s24  ;;  %v571_v37 = vpack.c.bf16 %v2555_v21, %v2539_v38  ;;  %v323_v24 = vmul.f32 %v1660_v60, %v2555_v21  ;;  %v362_v58 = vrot.slane %v2555_v21, 1 }
 0x115   :  { %v570_v51 = vpack.c.bf16 %v2562_v6, %v2545_v52  ;;  %v2587_v45 = vsel %vm363_vm0, %v358_v59, %v359_v16  ;;  %v360_v60 = vrot.slane %v2562_v6, 1 }
 0x116   :  { %v600_v23 = vmul.f32 %v1719_v40, %v2587_v45  ;;  %v339_v55 = vpack.c.bf16 %v2383_v31, %v323_v24  ;;  %v2601_v59 = vsel %vm363_vm0, %v361_v10, %v362_v58  ;;  %v2607_v9 = vsel %vm363_vm0, %v362_v58, %v347_v56  ;;  %v1670_v40 = vld [vmem:[%s3867_s5 + $0xd0] sm:$0xff]  ;;  %v1671_v31 = vld [vmem:[%s3867_s5 + $0xd8] sm:$0xff] }
 0x117   :  { %v2619_v24 = vmul.f32 %v1722_v30, %v2601_v59  ;;  %v2622_v27 = vmul.f32 %v1723_v34, %v2607_v9  ;;  %v2626_v56 = vsel %vm363_vm0, %v360_v60, %v361_v10  ;;  %v2630_v58 = vsel %vm363_vm0, %v359_v16, %v360_v60  ;;  %v1669_v30 = vld [vmem:[%s3867_s5 + $0xc8] sm:$0xff]  ;;  %v1686_v34 = vld [vmem:[%s3867_s5 + $0x150] sm:$0xff] }
 0x118   :  { %633 = vrot.lane.b32.xlu0 %v570_v51, %s2147_s23  ;;  %635 = vrot.lane.b32.xlu1 %v571_v37, %s2147_s23  ;;  %v610_v10 = vpack.c.bf16 %v600_v23, %v599_v15  ;;  %v601_v16 = vmul.f32 %v1720_v48, %v2630_v58  ;;  %v602_v60 = vmul.f32 %v1721_v25, %v2626_v56  ;;  %v1685_v25 = vld [vmem:[%s3867_s5 + $0x148] sm:$0xff]  ;;  %v1674_v15 = vld [vmem:[%s3867_s5 + $0xf0] sm:$0xff] }
 0x119   :  { %v612_v0 = vpack.c.bf16 %v2622_v27, %v2619_v24  ;;  %v2655_v51 = vmul.f32 %v1676_v22, %v2607_v9  ;;  %v2658_v23 = vmul.f32 %v1670_v40, %v2481_v41  ;;  %v2661_v48 = vmul.f32 %v1671_v31, %v2453_v7  ;;  %v1675_v31 = vld [vmem:[%s3867_s5 + $0xf8] sm:$0xff]  ;;  %v1672_v24 = vld [vmem:[%s3867_s5 + $0xe0] sm:$0xff] }
 0x11a   :  { %v611_v37 = vpack.c.bf16 %v602_v60, %v601_v16  ;;  %v2670_v27 = vmul.f32 %v1668_v3, %v2372_v26  ;;  %v2673_v22 = vmul.f32 %v1669_v30, %v2462_v19  ;;  %v2676_v40 = vmul.f32 %v1686_v34, %v2530_v33  ;;  %v1673_v16 = vld [vmem:[%s3867_s5 + $0xe8] sm:$0xff]  ;;  %v1688_v3 = vld [vmem:[%s3867_s5 + $0x160] sm:$0xff]  ;;  %v1690_v30 = vld [vmem:[%s3867_s5 + $0x170] sm:$0xff] }
 0x11b   :  { %3933 = vst [vmem:[#allocation11_spill] sm:$0xff] %v2658_v23  ;;  %3934 = vst [vmem:[#allocation12_spill] sm:$0xff] %v2661_v48  ;;  %v2692_v34 = vmul.f32 %v1687_v1, %v2519_v5  ;;  %v2695_v60 = vmul.f32 %v1684_v54, %v2512_v14  ;;  %v2712_v1 = vmul.f32 %v1685_v25, %v2534_v44  ;;  %v1689_v48 = vld [vmem:[%s3867_s5 + $0x168] sm:$0xff]  ;;  %v1691_v54 = vld [vmem:[%s3867_s5 + $0x178] sm:$0xff] }
 0x11c   :  { %3935 = vst [vmem:[#allocation13_spill] sm:$0xff] %v2670_v27  ;;  %3936 = vst [vmem:[#allocation14_spill] sm:$0xff] %v2673_v22  ;;  %655 = vrot.lane.b32.xlu1 %v610_v10, %s2148_s24  ;;  %429 = vrot.lane.b32.xlu0 %v339_v55, %s2147_s23  ;;  %v2715_v23 = vmul.f32 %v1674_v15, %v2562_v6  ;;  %v2726_v10 = vmul.f32 %v1675_v31, %v2539_v38  ;;  %v1784_v27 = vld [vmem:[%s3867_s5 + $0x400] sm:$0xff]  ;;  %v1771_v55 = vld [vmem:[%s3867_s5 + $0x398] sm:$0xff] }
 0x11d   :  { %3937 = vst [vmem:[#allocation15_spill] sm:$0xff] %v2676_v40  ;;  %3938 = vst [vmem:[#allocation16_spill] sm:$0xff] %v2692_v34  ;;  %v2729_v25 = vmul.f32 %v1672_v24, %v2468_v28  ;;  %v2732_v15 = vmul.f32 %v1673_v16, %v2545_v52  ;;  %v2743_v31 = vmul.f32 %v1708_v43, %v2356_v18  ;;  %v1785_v40 = vld [vmem:[%s3867_s5 + $0x408] sm:$0xff]  ;;  %v1770_v34 = vld [vmem:[%s3867_s5 + $0x390] sm:$0xff] }
 0x11e   :  { %3939 = vst [vmem:[#allocation17_spill] sm:$0xff] %v2695_v60  ;;  %3940 = vst [vmem:[#allocation18_spill] sm:$0xff] %v2712_v1  ;;  %v2746_v24 = vmul.f32 %v1709_v63, %v2338_v11  ;;  %v2749_v16 = vmul.f32 %v1688_v3, %v2587_v45  ;;  %v2765_v3 = vmul.f32 %v1689_v48, %v2630_v58  ;;  %v1786_v1 = vld [vmem:[%s3867_s5 + $0x410] sm:$0xff]  ;;  %v1787_v22 = vld [vmem:[%s3867_s5 + $0x418] sm:$0xff] }
 0x11f   :  { %3941 = vst [vmem:[#allocation19_spill] sm:$0xff] %v2729_v25  ;;  %3942 = vst [vmem:[#allocation20_spill] sm:$0xff] %v2732_v15  ;;  %v2768_v60 = vmul.f32 %v1690_v30, %v2626_v56  ;;  %v1710_v43 = vld [vmem:[%s3867_s5 + $0x290] sm:$0xff]  ;;  %v2785_v30 = vmul.f32 %v1691_v54, %v2601_v59  ;;  %v2788_v25 = vmul.f32 %v1784_v27, %v2338_v11  ;;  %v1711_v15 = vld [vmem:[%s3867_s5 + $0x298] sm:$0xff] }
 0x120   :  { %3943 = vst [vmem:[#allocation21_spill] sm:$0xff] %v2749_v16  ;;  %3944 = vst [vmem:[#allocation22_spill] sm:$0xff] %v2765_v3  ;;  %659 = vrot.lane.b32.xlu1 %v612_v0, %s2148_s24  ;;  %657 = vrot.lane.b32.xlu0 %v611_v37, %s2148_s24  ;;  %v1774_v63 = vld [vmem:[%s3867_s5 + $0x3b0] sm:$0xff]  ;;  %v2799_v37 = vmul.f32 %v1785_v40, %v2326_v4  ;;  %v2802_v54 = vmul.f32 %v1770_v34, %v2289_v50  ;;  %v1775_v27 = vld [vmem:[%s3867_s5 + $0x3b8] sm:$0xff] }
 0x121   :  { %3945 = vst [vmem:[#allocation23_spill] sm:$0xff] %v2768_v60  ;;  %v2805_v11 = vmul.f32 %v1771_v55, %v2361_v20  ;;  %v1772_v48 = vld [vmem:[%s3867_s5 + $0x3a0] sm:$0xff]  ;;  %v2816_v40 = vmul.f32 %v1786_v1, %v2428_v57  ;;  %v2819_v34 = vmul.f32 %v1787_v22, %v2437_v62  ;;  %v2822_v55 = vmul.f32 %v1710_v43, %v2326_v4  ;;  %v1773_v16 = vld [vmem:[%s3867_s5 + $0x3a8] sm:$0xff]  ;;  %v1790_v3 = vld [vmem:[%s3867_s5 + $0x430] sm:$0xff] }
 0x122   :  { %3946 = vst [vmem:[#allocation24_spill] sm:$0xff] %v2802_v54  ;;  %v1791_v0 = vld [vmem:[%s3867_s5 + $0x438] sm:$0xff]  ;;  %v2839_v22 = vmul.f32 %v1711_v15, %v2428_v57  ;;  %v2842_v1 = vmul.f32 %v1774_v63, %v2372_v26  ;;  %v1788_v43 = vld [vmem:[%s3867_s5 + $0x420] sm:$0xff]  ;;  %v1789_v60 = vld [vmem:[%s3867_s5 + $0x428] sm:$0xff]  ;;  %v3948_v57 = vpack.c.bf16 %v2341_v12, %v2350_v17  ;;  %v3949_v15 = vpack.c.bf16 %v2475_v35, %v2655_v51 }
 0x123   :  { %3947 = vst [vmem:[#allocation25_spill] sm:$0xff] %v2805_v11  ;;  %v1778_v62 = vld [vmem:[%s3867_s5 + $0x3d0] sm:$0xff]  ;;  %v2865_v54 = vmul.f32 %v1775_v27, %v2462_v19  ;;  %v2868_v11 = vmul.f32 %v1772_v48, %v2379_v29  ;;  %v1779_v4 = vld [vmem:[%s3867_s5 + $0x3d8] sm:$0xff]  ;;  %v1776_v12 = vld [vmem:[%s3867_s5 + $0x3c0] sm:$0xff]  ;;  %v2879_v35 = vmul.f32 %v1773_v16, %v2343_v13  ;;  %v2882_v51 = vmul.f32 %v1790_v3, %v2512_v14 }
 0x124   :  { %455 = vrot.lane.b32.xlu1 %v3948_v57, %s2148_s24  ;;  %453 = vrot.lane.b32.xlu0 %v3949_v15, %s2148_s24  ;;  %v2885_v48 = vmul.f32 %v1791_v0, %v2534_v44  ;;  %v1777_v27 = vld [vmem:[%s3867_s5 + $0x3c8] sm:$0xff]  ;;  %v1794_v57 = vld [vmem:[%s3867_s5 + $0x450] sm:$0xff]  ;;  %v2896_v16 = vmul.f32 %v1788_v43, %v2433_v61  ;;  %v2899_v14 = vmul.f32 %v1789_v60, %v2420_v53  ;;  %v3979_v63 = vrot.slane %v2379_v29, 7 }
 0x125   :  { %3950 = vst [vmem:[#allocation26_spill] sm:$0xff] %v2882_v51  ;;  %v2902_v44 = vmul.f32 %v1778_v62, %v2468_v28  ;;  %v1795_v3 = vld [vmem:[%s3867_s5 + $0x458] sm:$0xff]  ;;  %v1792_v0 = vld [vmem:[%s3867_s5 + $0x440] sm:$0xff]  ;;  %v1793_v15 = vld [vmem:[%s3867_s5 + $0x448] sm:$0xff]  ;;  %v2918_v60 = vmul.f32 %v1779_v4, %v2545_v52  ;;  %v2921_v62 = vmul.f32 %v1776_v12, %v2481_v41  ;;  %v3952_v4 = vpack.c.bf16 %v2443_v2, %v2412_v49 }
 0x126   :  { %3951 = vst [vmem:[#allocation27_spill] sm:$0xff] %v2885_v48  ;;  %v1782_v43 = vld [vmem:[%s3867_s5 + $0x3f0] sm:$0xff]  ;;  %v1783_v17 = vld [vmem:[%s3867_s5 + $0x3f8] sm:$0xff]  ;;  %v1780_v61 = vld [vmem:[%s3867_s5 + $0x3e0] sm:$0xff]  ;;  %v3953_v12 = vpack.c.bf16 %v2399_v39, %v2386_v32  ;;  %v2944_v51 = vmul.f32 %v1777_v27, %v2453_v7  ;;  %v2947_v48 = vmul.f32 %v1794_v57, %v2587_v45  ;;  %v2958_v39 = vmul.f32 %v1795_v3, %v2630_v58 }
 0x127   :  { %v1781_v53 = vld [vmem:[%s3867_s5 + $0x3e8] sm:$0xff]  ;;  %v1798_v49 = vld [vmem:[%s3867_s5 + $0x470] sm:$0xff]  ;;  %v2961_v2 = vmul.f32 %v1792_v0, %v2530_v33  ;;  %v2964_v45 = vmul.f32 %v1793_v15, %v2519_v5  ;;  %v1799_v27 = vld [vmem:[%s3867_s5 + $0x478] sm:$0xff]  ;;  %v2975_v58 = vmul.f32 %v1782_v43, %v2555_v21  ;;  %v2978_v33 = vmul.f32 %v1783_v17, %v2280_v46 }
 0x128   :  { %435 = vrot.lane.b32.xlu1 %v3952_v4, %s2147_s23  ;;  %433 = vrot.lane.b32.xlu0 %v3953_v12, %s2147_s23  ;;  %3954 = vst [vmem:[#allocation28_spill] sm:$0xff] %v2947_v48  ;;  %v1796_v57 = vld [vmem:[%s3867_s5 + $0x460] sm:$0xff]  ;;  %v2981_v5 = vmul.f32 %v1780_v61, %v2562_v6  ;;  %v1797_v15 = vld [vmem:[%s3867_s5 + $0x468] sm:$0xff]  ;;  %v2991_v12 = vmul.f32 %v1781_v53, %v2539_v38  ;;  %v244_v4 = vrot.slane %v2562_v6, 7 }
 0x129   :  { %3955 = vst [vmem:[#allocation29_spill] sm:$0xff] %v2961_v2  ;;  %3956 = vst [vmem:[#allocation30_spill] sm:$0xff] %v2964_v45  ;;  %v2994_v43 = vmul.f32 %v1798_v49, %v2607_v9  ;;  %v268_v17 = vld [vmem:[%s3867_s5 + $0x10] sm:$0xff]  ;;  %v269_v61 = vld [vmem:[%s3867_s5 + $0x18] sm:$0xff]  ;;  %v3962_v0 = vpack.c.bf16 %v2488_v47, %v2478_v36  ;;  %v3014_v3 = vmul.f32 %v1799_v27, %v2356_v18  ;;  %v3973_v27 = vrot.slane %v2280_v46, 7 }
 0x12a   :  { %3957 = vst [vmem:[#allocation31_spill] sm:$0xff] %v2975_v58  ;;  %3958 = vst [vmem:[#allocation32_spill] sm:$0xff] %v2978_v33  ;;  %v3963_v53 = vld [vmem:[#allocation10_spill] sm:$0xff]  ;;  %v3017_v32 = vmul.f32 %v1796_v57, %v2626_v56  ;;  %v1699_v6 = vld [vmem:[%s3867_s5 + $0x1b8] sm:$0xff]  ;;  %v3025_v47 = vmul.f32 %v1797_v15, %v2601_v59  ;;  %v3977_v49 = vrot.slane %v2343_v13, 7  ;;  %v3990_v58 = vrot.slane %v2361_v20, 7 }
 0x12b   :  { %3959 = vst [vmem:[#allocation33_spill] sm:$0xff] %v2981_v5  ;;  %3960 = vst [vmem:[#allocation34_spill] sm:$0xff] %v2991_v12  ;;  %v3964_v9 = vpack.c.bf16 %v2552_v8, %v3963_v53  ;;  %v3968_v8 = vld [vmem:[#allocation5_spill] sm:$0xff]  ;;  %v3970_v53 = vld [vmem:[#allocation6_spill] sm:$0xff]  ;;  %v4014_v2 = vrot.slane %v2468_v28, 7 }
 0x12c   :  { %3961 = vst [vmem:[#allocation35_spill] sm:$0xff] %v2994_v43  ;;  %459 = vrot.lane.b32.xlu1 %v3962_v0, %s2148_s24  ;;  %3965 = vst [vmem:[#allocation10_spill] sm:$0xff] %v3014_v3  ;;  %v3969_v0 = vrot.slane %v3968_v8, 7  ;;  %v1698_v59 = vld [vmem:[%s3867_s5 + $0x1b0] sm:$0xff]  ;;  %v3978_v15 = vmov %v3977_v49  ;;  %v3982_v3 = vrot.slane %v2361_v20, 7  ;;  %v1700_v13 = vld [vmem:[%s3867_s5 + $0x1c0] sm:$0xff] }
 0x12d   :  { %457 = vrot.lane.b32.xlu0 %v3964_v9, %s2148_s24  ;;  %3966 = vst [vmem:[#allocation36_spill] sm:$0xff] %v3017_v32  ;;  %3967 = vst [vmem:[#allocation37_spill] sm:$0xff] %v3025_v47  ;;  %v3971_v9 = vrot.slane %v3970_v53, 7  ;;  %v3076_v43 = vsel %vm249_vm1, %v3979_v63, %v3978_v15  ;;  %v246_v15 = vrot.slane %v2555_v21, 7  ;;  %v3986_v32 = vld [vmem:[#allocation14_spill] sm:$0xff]  ;;  %v3987_v47 = vld [vmem:[#allocation13_spill] sm:$0xff] }
 0x12e   :  { %v3107_v12 = vmul.f32 %v1698_v59, %v3076_v43  ;;  %v3991_v21 = vrot.slane %v2289_v50, 7  ;;  %v3994_v59 = vrot.slane %v2481_v41, 7  ;;  %v3995_v20 = vrot.slane %v2462_v19, 7 }
 0x12f   :  { %v3033_v18 = vsel %vm249_vm1, %v3971_v9, %v3969_v0  ;;  %v3972_v56 = vmov %v3971_v9  ;;  %v3976_v9 = vrot.slane %v2372_v26, 7  ;;  %v4000_v19 = vrot.slane %v2468_v28, 7 }
 0x130   :  { %v3041_v57 = vsel %vm249_vm1, %v3973_v27, %v3972_v56  ;;  %v3052_v0 = vmul.f32 %v269_v61, %v3033_v18  ;;  %v1696_v27 = vld [vmem:[%s3867_s5 + $0x1a0] sm:$0xff]  ;;  %v3984_v61 = vld [vmem:[#allocation11_spill] sm:$0xff]  ;;  %v3115_v33 = vsel %vm249_vm1, %v3991_v21, %v3990_v58  ;;  %v3996_v58 = vmov %v3995_v20 }
 0x131   :  { %v3049_v36 = vmul.f32 %v268_v17, %v3041_v57  ;;  %v3060_v56 = vsel %vm249_vm1, %v3977_v49, %v3976_v9  ;;  %v1697_v17 = vld [vmem:[%s3867_s5 + $0x1a8] sm:$0xff]  ;;  %v3981_v9 = vmov %v3979_v63  ;;  %v4017_v28 = vrot.slane %v2539_v38, 7 }
 0x132   :  { %3975 = vst [vmem:[#allocation6_spill] sm:$0xff] %v3052_v0  ;;  %v3079_v49 = vmul.f32 %v1699_v6, %v3060_v56  ;;  %v3087_v5 = vsel %vm249_vm1, %v3982_v3, %v3981_v9  ;;  %v1701_v63 = vld [vmem:[%s3867_s5 + $0x1c8] sm:$0xff]  ;;  %v3983_v6 = vld [vmem:[#allocation12_spill] sm:$0xff]  ;;  %v3988_v3 = vpack.c.bf16 %v3986_v32, %v3987_v47  ;;  %v3121_v32 = vmul.f32 %v1696_v27, %v3115_v33  ;;  %v1702_v27 = vld [vmem:[%s3867_s5 + $0x1d0] sm:$0xff] }
 0x133   :  { %3974 = vst [vmem:[#allocation5_spill] sm:$0xff] %v3049_v36  ;;  %v3985_v29 = vpack.c.bf16 %v3983_v6, %v3984_v61  ;;  %3989 = vst [vmem:[#allocation12_spill] sm:$0xff] %v3107_v12  ;;  %v1703_v61 = vld [vmem:[%s3867_s5 + $0x1d8] sm:$0xff]  ;;  %v3124_v47 = vmul.f32 %v1697_v17, %v3087_v5  ;;  %v3132_v6 = vsel %vm249_vm1, %v3995_v20, %v3994_v59  ;;  %v4003_v9 = vrot.slane %v2481_v41, 7  ;;  %v266_v41 = vld [vmem:[%s3867_s5] sm:$0xff] }
 0x134   :  { %3980 = vst [vmem:[#allocation38_spill] sm:$0xff] %v3079_v49  ;;  %437 = vrot.lane.b32.xlu0 %v3988_v3, %s2147_s23  ;;  %3992 = vst [vmem:[#allocation11_spill] sm:$0xff] %v3121_v32  ;;  %v3151_v59 = vmul.f32 %v1701_v63, %v3132_v6  ;;  %v1706_v63 = vld [vmem:[%s3867_s5 + $0x1f0] sm:$0xff]  ;;  %v4010_v0 = vld [vmem:[#allocation17_spill] sm:$0xff] }
 0x135   :  { %439 = vrot.lane.b32.xlu1 %v3985_v29, %s2147_s23  ;;  %3993 = vst [vmem:[#allocation14_spill] sm:$0xff] %v3124_v47  ;;  %v3997_v29 = vrot.slane %v2372_v26, 7  ;;  %v4001_v26 = vrot.slane %v2453_v7, 7  ;;  %v1707_v7 = vld [vmem:[%s3867_s5 + $0x1f8] sm:$0xff]  ;;  %v4013_v47 = vrot.slane %v2545_v52, 7 }
 0x136   :  { %3999 = vst [vmem:[#allocation39_spill] sm:$0xff] %v3151_v59  ;;  %v4030_v59 = vrot.slane %v3968_v8, 7 }
 0x137   :  { %v3140_v3 = vsel %vm249_vm1, %v3997_v29, %v3996_v58  ;;  %v3159_v20 = vsel %vm249_vm1, %v4001_v26, %v4000_v19  ;;  %v1704_v58 = vld [vmem:[%s3867_s5 + $0x1e0] sm:$0xff]  ;;  %v4002_v29 = vmov %v4001_v26  ;;  %v4005_v26 = vrot.slane %v2545_v52, 7 }
 0x138   :  { %v3148_v21 = vmul.f32 %v1700_v13, %v3140_v3  ;;  %v1705_v13 = vld [vmem:[%s3867_s5 + $0x1e8] sm:$0xff]  ;;  %v3175_v17 = vsel %vm249_vm1, %v4003_v9, %v4002_v29  ;;  %v3178_v19 = vmul.f32 %v1703_v61, %v3159_v20  ;;  %v4006_v9 = vld [vmem:[#allocation16_spill] sm:$0xff]  ;;  %v4007_v61 = vld [vmem:[#allocation15_spill] sm:$0xff]  ;;  %v3214_v45 = vsel %vm249_vm1, %v4014_v2, %v4013_v47 }
 0x139   :  { %v3184_v36 = vsel %vm249_vm1, %v4005_v26, %v244_v4  ;;  %v4008_v29 = vpack.c.bf16 %v4006_v9, %v4007_v61  ;;  %v4009_v26 = vld [vmem:[#allocation18_spill] sm:$0xff]  ;;  %v3206_v32 = vmul.f32 %v1702_v27, %v3175_v17  ;;  %v272_v9 = vld [vmem:[%s3867_s5 + $0x30] sm:$0xff]  ;;  %v3232_v52 = vsel %vm249_vm1, %v4017_v28, %v246_v15 }
 0x13a   :  { %3998 = vst [vmem:[#allocation13_spill] sm:$0xff] %v3148_v21  ;;  %4004 = vst [vmem:[#allocation40_spill] sm:$0xff] %v3178_v19  ;;  %v4011_v12 = vpack.c.bf16 %v4009_v26, %v4010_v0  ;;  %v3223_v0 = vmul.f32 %v1704_v58, %v3214_v45  ;;  %v3226_v27 = vmul.f32 %v1705_v13, %v3184_v36  ;;  %v4018_v2 = vmov %v4017_v28  ;;  %v267_v58 = vld [vmem:[%s3867_s5 + $0x8] sm:$0xff]  ;;  %v270_v13 = vld [vmem:[%s3867_s5 + $0x20] sm:$0xff] }
 0x13b   :  { %463 = vrot.lane.b32.xlu1 %v4008_v29, %s2148_s24  ;;  %4012 = vst [vmem:[#allocation16_spill] sm:$0xff] %v3206_v32  ;;  %v3238_v47 = vsel %vm249_vm1, %v244_v4, %v4018_v2  ;;  %v3252_v38 = vmul.f32 %v1707_v7, %v3232_v52  ;;  %v3255_v4 = vmul.f32 %v266_v41, %v3232_v52  ;;  %v271_v26 = vld [vmem:[%s3867_s5 + $0x28] sm:$0xff]  ;;  %v276_v28 = vld [vmem:[%s3867_s5 + $0x50] sm:$0xff]  ;;  %v274_v2 = vld [vmem:[%s3867_s5 + $0x40] sm:$0xff]  ;;  %v4021_v7 = vrot.slane %v2280_v46, 7 }
 0x13c   :  { %461 = vrot.lane.b32.xlu0 %v4011_v12, %s2148_s24  ;;  %v273_v12 = vld [vmem:[%s3867_s5 + $0x38] sm:$0xff]  ;;  %4015 = vst [vmem:[#allocation15_spill] sm:$0xff] %v3223_v0  ;;  %4016 = vst [vmem:[#allocation18_spill] sm:$0xff] %v3226_v27  ;;  %v3249_v29 = vmul.f32 %v1706_v63, %v3238_v47  ;;  %v3275_v61 = vmul.f32 %v272_v9, %v3087_v5  ;;  %v275_v63 = vld [vmem:[%s3867_s5 + $0x48] sm:$0xff]  ;;  %v4029_v21 = vrot.slane %v2289_v50, 7 }
 0x13d   :  { %4020 = vst [vmem:[#allocation41_spill] sm:$0xff] %v3255_v4  ;;  %v3272_v41 = vsel %vm249_vm1, %v246_v15, %v4021_v7  ;;  %v3278_v49 = vmul.f32 %v273_v12, %v3076_v43  ;;  %v277_v32 = vld [vmem:[%s3867_s5 + $0x58] sm:$0xff]  ;;  %v278_v0 = vld [vmem:[%s3867_s5 + $0x60] sm:$0xff]  ;;  %v4024_v15 = vpack.c.bf16 %v2726_v10, %v2715_v23  ;;  %v4026_v12 = vld [vmem:[#allocation19_spill] sm:$0xff] }
 0x13e   :  { %4019 = vst [vmem:[#allocation17_spill] sm:$0xff] %v3249_v29  ;;  %4022 = vst [vmem:[#allocation42_spill] sm:$0xff] %v3275_v61  ;;  %v4025_v9 = vld [vmem:[#allocation20_spill] sm:$0xff]  ;;  %v3300_v19 = vmul.f32 %v267_v58, %v3272_v41  ;;  %v262_v48 = vsel %vm249_vm1, %v4030_v59, %v4029_v21  ;;  %v280_v23 = vld [vmem:[%s3867_s5 + $0x70] sm:$0xff]  ;;  %v3359_v27 = vmul.f32 %v278_v0, %v3159_v20 }
 0x13f   :  { %4023 = vst [vmem:[#allocation43_spill] sm:$0xff] %v3278_v49  ;;  %443 = vrot.lane.b32.xlu1 %v4024_v15, %s2147_s23  ;;  %v4027_v7 = vpack.c.bf16 %v4025_v9, %v4026_v12  ;;  %v281_v10 = vld [vmem:[%s3867_s5 + $0x78] sm:$0xff]  ;;  %v3316_v58 = vmul.f32 %v270_v13, %v262_v48  ;;  %v3319_v9 = vmul.f32 %v271_v26, %v3115_v33  ;;  %v1752_v21 = vld [vmem:[%s3867_s5 + $0x300] sm:$0xff]  ;;  %v1693_v59 = vld [vmem:[%s3867_s5 + $0x188] sm:$0xff] }
 0x140   :  { %4028 = vst [vmem:[#allocation20_spill] sm:$0xff] %v3300_v19  ;;  %v3322_v12 = vmul.f32 %v276_v28, %v3132_v6  ;;  %v3333_v13 = vmul.f32 %v277_v32, %v3175_v17  ;;  %v3336_v26 = vmul.f32 %v274_v2, %v3060_v56  ;;  %v3339_v28 = vmul.f32 %v275_v63, %v3140_v3  ;;  %v1692_v15 = vld [vmem:[%s3867_s5 + $0x180] sm:$0xff]  ;;  %v1694_v61 = vld [vmem:[%s3867_s5 + $0x190] sm:$0xff]  ;;  %v1695_v49 = vld [vmem:[%s3867_s5 + $0x198] sm:$0xff] }
 0x141   :  { %441 = vrot.lane.b32.xlu0 %v4027_v7, %s2147_s23  ;;  %4031 = vst [vmem:[#allocation19_spill] sm:$0xff] %v3316_v58  ;;  %4032 = vst [vmem:[#allocation44_spill] sm:$0xff] %v3319_v9  ;;  %v1753_v7 = vld [vmem:[%s3867_s5 + $0x308] sm:$0xff]  ;;  %v3353_v2 = vmul.f32 %v280_v23, %v3184_v36  ;;  %v3356_v63 = vmul.f32 %v281_v10, %v3238_v47  ;;  %v1754_v32 = vld [vmem:[%s3867_s5 + $0x310] sm:$0xff]  ;;  %v4037_v0 = vpack.c.bf16 %v3970_v53, %v2280_v46 }
 0x142   :  { %v4034_v23 = vld [vmem:[#allocation8_spill] sm:$0xff]  ;;  %v4035_v58 = vld [vmem:[#allocation7_spill] sm:$0xff]  ;;  %v3383_v19 = vmul.f32 %v279_v42, %v3214_v45  ;;  %v3394_v53 = vmul.f32 %v1753_v7, %v3033_v18  ;;  %v3400_v42 = vmul.f32 %v1692_v15, %v3272_v41  ;;  %v3411_v7 = vmul.f32 %v1693_v59, %v3041_v57  ;;  %v1757_v15 = vld [vmem:[%s3867_s5 + $0x328] sm:$0xff] }
 0x143   :  { %4033 = vst [vmem:[#allocation45_spill] sm:$0xff] %v3353_v2  ;;  %v4036_v10 = vpack.c.bf16 %v4034_v23, %v4035_v58  ;;  %v1755_v29 = vld [vmem:[%s3867_s5 + $0x318] sm:$0xff]  ;;  %v1758_v58 = vld [vmem:[%s3867_s5 + $0x330] sm:$0xff]  ;;  %v3397_v23 = vmul.f32 %v1752_v21, %v3041_v57  ;;  %v3414_v21 = vmul.f32 %v1694_v61, %v3033_v18  ;;  %v3416_v9 = vmul.f32 %v1695_v49, %v262_v48  ;;  %v1760_v46 = vld [vmem:[%s3867_s5 + $0x340] sm:$0xff] }
 0x144   :  { %4038 = vst [vmem:[#allocation8_spill] sm:$0xff] %v3394_v53  ;;  %v1762_v4 = vld [vmem:[%s3867_s5 + $0x350] sm:$0xff]  ;;  %v3429_v59 = vmul.f32 %v1754_v32, %v262_v48  ;;  %v3432_v18 = vmul.f32 %v1755_v29, %v3115_v33  ;;  %v3435_v49 = vmul.f32 %v1758_v58, %v3060_v56  ;;  %v1763_v61 = vld [vmem:[%s3867_s5 + $0x358] sm:$0xff]  ;;  %v1761_v2 = vld [vmem:[%s3867_s5 + $0x348] sm:$0xff]  ;;  %v4040_v48 = vpack.c.bf16 %v2746_v24, %v2743_v31 }
 0x145   :  { %1143 = vrot.lane.b32.xlu1 %v4036_v10, %s2147_s23  ;;  %621 = vrot.lane.b32.xlu0 %v4037_v0, %s2147_s23  ;;  %4039 = vst [vmem:[#allocation7_spill] sm:$0xff] %v3397_v23  ;;  %v1759_v10 = vld [vmem:[%s3867_s5 + $0x338] sm:$0xff]  ;;  %v1756_v0 = vld [vmem:[%s3867_s5 + $0x320] sm:$0xff]  ;;  %v4041_v33 = vld [vmem:[#allocation22_spill] sm:$0xff]  ;;  %v556_v32 = vpack.c.bf16 %v3411_v7, %v3400_v42  ;;  %v557_v58 = vpack.c.bf16 %v3416_v9, %v3414_v21 }
 0x146   :  { %v1766_v57 = vld [vmem:[%s3867_s5 + $0x370] sm:$0xff]  ;;  %v4042_v56 = vld [vmem:[#allocation21_spill] sm:$0xff]  ;;  %v3459_v23 = vmul.f32 %v1759_v10, %v3140_v3  ;;  %v1767_v53 = vld [vmem:[%s3867_s5 + $0x378] sm:$0xff]  ;;  %v3476_v3 = vmul.f32 %v1762_v4, %v3159_v20  ;;  %v3487_v24 = vmul.f32 %v1760_v46, %v3132_v6 }
 0x147   :  { %v4043_v29 = vpack.c.bf16 %v4041_v33, %v4042_v56  ;;  %v1764_v31 = vld [vmem:[%s3867_s5 + $0x360] sm:$0xff]  ;;  %v3473_v33 = vmul.f32 %v1757_v15, %v3076_v43  ;;  %v1765_v10 = vld [vmem:[%s3867_s5 + $0x368] sm:$0xff]  ;;  %v3495_v20 = vmul.f32 %v1766_v57, %v3232_v52  ;;  %v3498_v4 = vmul.f32 %v1767_v53, %v3272_v41  ;;  %v4049_v46 = vld [vmem:[#allocation24_spill] sm:$0xff] }
 0x148   :  { %v1048_v56 = vpack.c.bf16 %v3459_v23, %v3435_v49  ;;  %v4052_v15 = vpack.c.bf16 %v2839_v22, %v2822_v55  ;;  %v4055_v57 = vld [vmem:[#allocation27_spill] sm:$0xff]  ;;  %v4061_v55 = vld [vmem:[#allocation28_spill] sm:$0xff] }
 0x149   :  { %645 = vrot.lane.b32.xlu1 %v4040_v48, %s2148_s24  ;;  %465 = vrot.lane.b32.xlu0 %v4043_v29, %s2148_s24  ;;  %v3470_v48 = vmul.f32 %v1756_v0, %v3087_v5  ;;  %v3484_v29 = vmul.f32 %v1763_v61, %v3214_v45  ;;  %v3490_v5 = vmul.f32 %v1761_v2, %v3175_v17  ;;  %v4044_v45 = vld [vmem:[#allocation23_spill] sm:$0xff]  ;;  %v4056_v61 = vld [vmem:[#allocation26_spill] sm:$0xff] }
 0x14a   :  { %v3501_v0 = vmul.f32 %v1764_v31, %v3184_v36  ;;  %v4045_v6 = vpack.c.bf16 %v2785_v30, %v4044_v45  ;;  %v4046_v17 = vpack.c.bf16 %v2289_v50, %v3968_v8  ;;  %v3516_v2 = vmul.f32 %v1765_v10, %v3238_v47  ;;  %v4048_v8 = vld [vmem:[#allocation25_spill] sm:$0xff]  ;;  %v4067_v31 = vld [vmem:[#allocation31_spill] sm:$0xff] }
 0x14b   :  { %v1047_v43 = vpack.c.bf16 %v3473_v33, %v3470_v48  ;;  %v1050_v52 = vpack.c.bf16 %v3484_v29, %v3476_v3  ;;  %v1049_v41 = vpack.c.bf16 %v3490_v5, %v3487_v24  ;;  %v1052_v36 = vpack.c.bf16 %v3498_v4, %v3495_v20  ;;  %v4070_v10 = vld [vmem:[#allocation33_spill] sm:$0xff]  ;;  %v4073_v45 = vld [vmem:[#allocation35_spill] sm:$0xff]  ;;  %v2106_v4 = vld [vmem:[%s3865_s3 + $0x8] sm:$0xff]  }
 0x14c   :  { %v1051_v30 = vpack.c.bf16 %v3516_v2, %v3501_v0  ;;  %v4047_v50 = vpack.c.bf16 %v2799_v37, %v2788_v25  ;;  %v4050_v53 = vpack.c.bf16 %v4048_v8, %v4049_v46  ;;  %v4051_v47 = vpack.c.bf16 %v2819_v34, %v2816_v40  ;;  %v2105_v20 = vld [vmem:[%s3865_s3] sm:$0xff]  }
 0x14d   :  { %467 = vrot.lane.b32.xlu1 %v4045_v6, %s2148_s24  ;;  %623 = vrot.lane.b32.xlu0 %v4046_v17, %s2147_s23  ;;  %v4053_v25 = vpack.c.bf16 %v2865_v54, %v2842_v1  ;;  %v4054_v37 = vpack.c.bf16 %v2879_v35, %v2868_v11  ;;  %v4057_v40 = vpack.c.bf16 %v4055_v57, %v4056_v61  ;;  %v4063_v1 = vld [vmem:[#allocation30_spill] sm:$0xff]  ;;  %v4064_v35 = vld [vmem:[#allocation29_spill] sm:$0xff]  ;;  %v4076_v17 = vld [vmem:[#allocation36_spill] sm:$0xff] }
 0x14e   :  { %v4058_v34 = vpack.c.bf16 %v2899_v14, %v2896_v16  ;;  %v4059_v54 = vpack.c.bf16 %v2918_v60, %v2902_v44  ;;  %v4060_v11 = vpack.c.bf16 %v2944_v51, %v2921_v62  ;;  %v4062_v22 = vpack.c.bf16 %v2958_v39, %v4061_v55  ;;  %v4066_v14 = vld [vmem:[#allocation32_spill] sm:$0xff]  ;;  %v4069_v60 = vld [vmem:[#allocation34_spill] sm:$0xff]  ;;  %v4075_v6 = vld [vmem:[#allocation37_spill] sm:$0xff]  ;;  %2010 = vmatprep.subr.bf16.mxu0 %v2105_v20 }
 0x14f   :  { %v4065_v16 = vpack.c.bf16 %v4063_v1, %v4064_v35  ;;  %v4068_v44 = vpack.c.bf16 %v4066_v14, %v4067_v31  ;;  %v4071_v51 = vpack.c.bf16 %v4069_v60, %v4070_v10  ;;  %v4072_v62 = vld [vmem:[#allocation10_spill] sm:$0xff]  ;;  %v4084_v1 = vld [vmem:[#allocation39_spill] sm:$0xff]  ;;  %v4085_v35 = vld [vmem:[#allocation13_spill] sm:$0xff] }
 0x150   :  { %v4074_v39 = vpack.c.bf16 %v4072_v62, %v4073_v45  ;;  %v2094_v60 = vld [vmem:[%s3864_s2 + $0x8] sm:$0xff]   ;;  %v4087_v62 = vld [vmem:[#allocation9_spill] sm:$0xff] }
 0x151   :  { %1167 = vrot.lane.b32.xlu1 %v4047_v50, %s2148_s24  ;;  %1145 = vrot.lane.b32.xlu0 %v4050_v53, %s2147_s23  ;;  %v4077_v50 = vpack.c.bf16 %v4075_v6, %v4076_v17  ;;  %v2095_v6 = vld [vmem:[%s3864_s2 + $0x10] sm:$0xff]   ;;  %v4088_v17 = vld [vmem:[#allocation40_spill] sm:$0xff] }
 0x155   :  { %1169 = vrot.lane.b32.xlu1 %v4051_v47, %s2148_s24  ;;  %647 = vrot.lane.b32.xlu0 %v4052_v15, %s2148_s24  ;;  %v4078_v47 = vld [vmem:[#allocation14_spill] sm:$0xff]  ;;  %v4079_v15 = vld [vmem:[#allocation11_spill] sm:$0xff] }
 0x159   :  { %1149 = vrot.lane.b32.xlu1 %v4053_v25, %s2147_s23  ;;  %1147 = vrot.lane.b32.xlu0 %v4054_v37, %s2147_s23  ;;  %v4080_v25 = vpack.c.bf16 %v4078_v47, %v4079_v15 }
 0x15d   :  { %1173 = vrot.lane.b32.xlu1 %v4057_v40, %s2148_s24  ;;  %1171 = vrot.lane.b32.xlu0 %v4058_v34, %s2148_s24 }
 0x161   :  { %1153 = vrot.lane.b32.xlu1 %v4059_v54, %s2147_s23  ;;  %1151 = vrot.lane.b32.xlu0 %v4060_v11, %s2147_s23  ;;  %v4081_v54 = vld [vmem:[#allocation38_spill] sm:$0xff]  ;;  %v4082_v11 = vld [vmem:[#allocation12_spill] sm:$0xff] }
 0x162   :  { %v4083_v55 = vpack.c.bf16 %v4081_v54, %v4082_v11 }
 0x165   :  { %1177 = vrot.lane.b32.xlu1 %v4062_v22, %s2148_s24  ;;  %1175 = vrot.lane.b32.xlu0 %v4065_v16, %s2148_s24  ;;  %v4086_v16 = vpack.c.bf16 %v4084_v1, %v4085_v35  ;;  %v4094_v1 = vld [vmem:[#allocation17_spill] sm:$0xff] }
 0x166   :  { %v4095_v35 = vpack.c.bf16 %v3252_v38, %v4094_v1  ;;  %v4105_v1 = vld [vmem:[#allocation43_spill] sm:$0xff] }
 0x169   :  { %1157 = vrot.lane.b32.xlu1 %v4068_v44, %s2147_s23  ;;  %1155 = vrot.lane.b32.xlu0 %v4071_v51, %s2147_s23 }
 0x16d   :  { %1181 = vrot.lane.b32.xlu1 %v4074_v39, %s2148_s24  ;;  %1179 = vrot.lane.b32.xlu0 %v4077_v50, %s2148_s24  ;;  %v4089_v50 = vld [vmem:[#allocation16_spill] sm:$0xff] }
 0x173   :  { %v432_v46 = vpop.permute.xlu1 %431 }
 0x178   :  { %v628_v8 = vpop.permute.xlu0 %627 }
 0x179   :  { %v672_v22 = vsel %vm469_vm2, %v4083_v55, %v628_v8  ;;  %v4090_v8 = vpack.c.bf16 %v4088_v17, %v4089_v50  ;;  %v2099_v17 = vld [vmem:[%s3864_s2 + $0x60] sm:$0xff]   ;;  %v4099_v50 = vld [vmem:[#allocation6_spill] sm:$0xff] }
 0x17c   :  { %v626_v53 = vpop.permute.xlu0 %625 }
 0x17d   :  { %v669_v37 = vsel %vm469_vm2, %v4080_v25, %v626_v53  ;;  %v2096_v25 = vld [vmem:[%s3864_s2 + $0x18] sm:$0xff]  }
 0x17e   :  { %v650_v57 = vpop.permute.xlu1 %649 }
 0x17f   :  { %v690_v61 = vsel %vm494_vm3, %v669_v37, %v650_v57  ;;  %v4091_v57 = vld [vmem:[#allocation18_spill] sm:$0xff] }
 0x180   :  { %1942 = vmatprep.mubr.msk.bf16.mxu1 %vm749_vm4, %v690_v61  ;;  %v4092_v61 = vld [vmem:[#allocation15_spill] sm:$0xff] }
 0x181   :  { %v630_v40 = vpop.permute.xlu0 %629 }
 0x182   :  { %v632_v34 = vpop.permute.xlu1 %631  ;;  %v675_v14 = vsel %vm469_vm2, %v4086_v16, %v630_v40  ;;  %v4093_v40 = vpack.c.bf16 %v4091_v57, %v4092_v61 }
 0x183   :  { %v678_v53 = vsel %vm469_vm2, %v4090_v8, %v632_v34  ;;  %v2097_v34 = vld [vmem:[%s3864_s2 + $0x20] sm:$0xff]  }
 0x184   :  { %v4100_v8 = vld [vmem:[#allocation5_spill] sm:$0xff] }
 0x186   :  { %v654_v31 = vpop.permute.xlu0 %653  ;;  %v652_v44 = vpop.permute.xlu1 %651 }
 0x187   :  { %v694_v10 = vsel %vm494_vm3, %v675_v14, %v654_v31  ;;  %v692_v51 = vsel %vm494_vm3, %v672_v22, %v652_v44  ;;  %v4096_v14 = vld [vmem:[#allocation20_spill] sm:$0xff]  ;;  %v4097_v31 = vld [vmem:[#allocation41_spill] sm:$0xff] }
 0x188   :  { %1943 = vmatmul.mubr.msk.bf16.vlgmr.msra.gmra.mrb[0].mxu1 %vm749_vm4, %v692_v51  ;;  %v4098_v44 = vpack.c.bf16 %v4096_v14, %v4097_v31  ;;  %v4108_v31 = vpack.c.bf16 %v3339_v28, %v3336_v26  ;;  %v2103_v28 = vld [vmem:[%s3864_s2 + $0x80] sm:$0xff]  }
 0x189   :  { %1955 = vmatpush3.bf16.msra.mxu1 %v4087_v62  ;;  %1946 = vmatprep.mubr.msk.bf16.mxu1 %vm749_vm4, %v694_v10  ;;  %v2098_v62 = vld [vmem:[%s3864_s2 + $0x28] sm:$0xff]  }
 0x18a   :  { %v634_v45 = vpop.permute.xlu0 %633  ;;  %v636_v39 = vpop.permute.xlu1 %635  ;;  %1956 = vmatprep.subr.bf16.mxu1 %v2094_v60 }
 0x18b   :  { %v681_v54 = vsel %vm469_vm2, %v4093_v40, %v634_v45  ;;  %v684_v16 = vsel %vm469_vm2, %v4095_v35, %v636_v39  ;;  %v4106_v35 = vld [vmem:[#allocation42_spill] sm:$0xff] }
 0x18d   :  { %1957 = vmatpush3.bf16.msra.mxu1 %v2094_v60 }
 0x18e   :  { %v656_v47 = vpop.permute.xlu1 %655  ;;  %v430_v15 = vpop.permute.xlu0 %429  ;;  %1958 = vmatprep.subr.bf16.mxu1 %v2095_v6 }
 0x18f   :  { %v696_v37 = vsel %vm494_vm3, %v678_v53, %v656_v47  ;;  %v472_v60 = vsel %vm469_vm2, %v4098_v44, %v430_v15  ;;  %v4101_v53 = vpack.c.bf16 %v4099_v50, %v4100_v8  ;;  %v4102_v15 = vld [vmem:[#allocation44_spill] sm:$0xff]  ;;  %v2104_v8 = vld [vmem:[%s3864_s2 + $0x88] sm:$0xff]  }
 0x190   :  { %1947 = vmatmul.mubr.msk.bf16.gmra.mrb[4].mxu1 %vm749_vm4, %v696_v37 }
 0x191   :  { %1959 = vmatpush3.bf16.msra.mxu1 %v2095_v6  ;;  %v475_v47 = vsel %vm469_vm2, %v4101_v53, %v432_v46 }
 0x192   :  { %v660_v11 = vpop.permute.xlu1 %659  ;;  %v658_v55 = vpop.permute.xlu0 %657  ;;  %1960 = vmatprep.subr.bf16.mxu1 %v2096_v25 }
 0x193   :  { %v698_v22 = vsel %vm494_vm3, %v681_v54, %v658_v55  ;;  %v700_v45 = vsel %vm494_vm3, %v684_v16, %v660_v11  ;;  %v2100_v54 = vld [vmem:[%s3864_s2 + $0x68] sm:$0xff]   ;;  %v4107_v16 = vpack.c.bf16 %v4105_v1, %v4106_v35  ;;  %v4116_v1 = vpack.c.bf16 %v3432_v18, %v3429_v59 }
 0x194   :  { %1950 = vmatprep.mubr.msk.bf16.mxu1 %vm749_vm4, %v698_v22  ;;  %v2101_v22 = vld [vmem:[%s3864_s2 + $0x70] sm:$0xff]  }
 0x195   :  { %1961 = vmatpush3.bf16.msra.mxu1 %v2096_v25  ;;  %v4103_v25 = vld [vmem:[#allocation19_spill] sm:$0xff] }
 0x196   :  { %v456_v10 = vpop.permute.xlu1 %455  ;;  %v454_v51 = vpop.permute.xlu0 %453  ;;  %1962 = vmatprep.subr.bf16.mxu1 %v2097_v34  ;;  %v4104_v37 = vpack.c.bf16 %v4102_v15, %v4103_v25 }
 0x197   :  { %v496_v6 = vsel %vm494_vm3, %v472_v60, %v454_v51  ;;  %v498_v11 = vsel %vm494_vm3, %v475_v47, %v456_v10  ;;  %v2102_v51 = vld [vmem:[%s3864_s2 + $0x78] sm:$0xff]   ;;  %v4110_v47 = vpack.c.bf16 %v3383_v19, %v3359_v27  ;;  %v4111_v19 = vld [vmem:[#allocation45_spill] sm:$0xff] }
 0x198   :  { %1951 = vmatmul.mubr.msk.bf16.gmra.mrb[8].mxu1 %vm749_vm4, %v700_v45  ;;  %v4112_v27 = vpack.c.bf16 %v3356_v63, %v4111_v19 }
 0x199   :  { %1963 = vmatpush3.bf16.msra.mxu1 %v2097_v34  ;;  %1966 = vmatprep.mubr.msk.bf16.mxu1 %vm749_vm4, %v496_v6 }
 0x19a   :  { %v436_v38 = vpop.permute.xlu1 %435  ;;  %v434_v39 = vpop.permute.xlu0 %433  ;;  %1964 = vmatprep.subr.bf16.mxu1 %v2098_v62 }
 0x19b   :  { %v478_v57 = vsel %vm469_vm2, %v4104_v37, %v434_v39  ;;  %v481_v14 = vsel %vm469_vm2, %v4107_v16, %v436_v38  ;;  %v4109_v38 = vpack.c.bf16 %v3333_v13, %v3322_v12 }
 0x19d   :  { %1965 = vmatpush3.bf16.msra.mxu1 %v2098_v62 }
 0x19e   :  { %v460_v61 = vpop.permute.xlu1 %459  ;;  %1982 = vmatprep.subr.bf16.mxu1 %v2099_v17 }
 0x19f   :  { %v458_v40 = vpop.permute.xlu0 %457  ;;  %v502_v62 = vsel %vm494_vm3, %v481_v14, %v460_v61 }
 0x1a0   :  { %v500_v55 = vsel %vm494_vm3, %v478_v57, %v458_v40  ;;  %1967 = vmatmul.mubr.msk.bf16.vlgmr.msra.gmra.mrb[12].mxu1 %vm749_vm4, %v498_v11  ;;  %v4113_v40 = vld [vmem:[#allocation8_spill] sm:$0xff] }
 0x1a1   :  { %1983 = vmatpush3.bf16.msra.mxu1 %v2099_v17  ;;  %1970 = vmatprep.mubr.msk.bf16.mxu1 %vm749_vm4, %v500_v55 }
 0x1a2   :  { %1984 = vmatprep.subr.bf16.mxu1 %v2100_v54 }
 0x1a5   :  { %1985 = vmatpush3.bf16.msra.mxu1 %v2100_v54  ;;  %v4114_v54 = vld [vmem:[#allocation7_spill] sm:$0xff] }
 0x1a6   :  { %v438_v34 = vpop.permute.xlu0 %437  ;;  %1986 = vmatprep.subr.bf16.mxu1 %v2101_v22  ;;  %v4115_v11 = vpack.c.bf16 %v4113_v40, %v4114_v54 }
 0x1a7   :  { %v440_v46 = vpop.permute.xlu1 %439  ;;  %v484_v44 = vsel %vm469_vm2, %v4108_v31, %v438_v34 }
 0x1a8   :  { %1971 = vmatmul.mubr.msk.bf16.gmra.mrb[0].mxu1 %vm749_vm4, %v502_v62  ;;  %v487_v39 = vsel %vm469_vm2, %v4109_v38, %v440_v46 }
 0x1a9   :  { %1987 = vmatpush3.bf16.msra.mxu1 %v2101_v22 }
 0x1aa   :  { %1988 = vmatprep.subr.bf16.mxu1 %v2102_v51 }
 0x1ad   :  { %v464_v60 = vpop.permute.xlu1 %463  ;;  %1989 = vmatpush3.bf16.msra.mxu1 %v2102_v51 }
 0x1ae   :  { %v462_v10 = vpop.permute.xlu0 %461  ;;  %1990 = vmatprep.subr.bf16.mxu1 %v2103_v28  ;;  %v506_v53 = vsel %vm494_vm3, %v487_v39, %v464_v60 }
 0x1af   :  { %v504_v45 = vsel %vm494_vm3, %v484_v44, %v462_v10 }
 0x1b0   :  { %1974 = vmatprep.mubr.msk.bf16.mxu1 %vm749_vm4, %v504_v45 }
 0x1b1   :  { %v444_v6 = vpop.permute.xlu1 %443  ;;  %1975 = vmatmul.mubr.msk.bf16.gmra.mrb[4].mxu1 %vm749_vm4, %v506_v53 }
 0x1b2   :  { %1991 = vmatpush3.bf16.msra.mxu1 %v2103_v28  ;;  %v493_v61 = vsel %vm469_vm2, %v4112_v27, %v444_v6 }
 0x1b3   :  { %v442_v26 = vpop.permute.xlu0 %441  ;;  %1992 = vmatprep.subr.bf16.mxu1 %v2104_v8 }
 0x1b4   :  { %v490_v15 = vsel %vm469_vm2, %v4110_v47, %v442_v26 }
 0x1b6   :  { %1993 = vmatpush3.bf16.msra.mxu1 %v2104_v8 }
 0x1b7   :  { %v1144_v17 = vpop.permute.xlu1 %1143  ;;  %v622_v50 = vpop.permute.xlu0 %621 }
 0x1b8   :  { %v663_v12 = vsel %vm469_vm2, %v556_v32, %v622_v50  ;;  %v1185_v55 = vsel %vm469_vm2, %v4115_v11, %v1144_v17 }
 0x1bb   :  { %v646_v13 = vpop.permute.xlu1 %645  ;;  %v466_v25 = vpop.permute.xlu0 %465 }
 0x1bc   :  { %v686_v37 = vsel %vm494_vm3, %v663_v12, %v646_v13  ;;  %v508_v57 = vsel %vm494_vm3, %v490_v15, %v466_v25 }
 0x1bd   :  { %1938 = vmatprep.mubr.msk.bf16.mxu0 %vm749_vm4, %v686_v37  ;;  %1978 = vmatprep.mubr.msk.bf16.mxu1 %vm749_vm4, %v508_v57 }
 0x1bf   :  { %v468_v42 = vpop.permute.xlu1 %467  ;;  %v624_v7 = vpop.permute.xlu0 %623 }
 0x1c0   :  { %v510_v32 = vsel %vm494_vm3, %v493_v61, %v468_v42  ;;  %v666_v63 = vsel %vm469_vm2, %v557_v58, %v624_v7 }
 0x1c1   :  { %1979 = vmatmul.mubr.msk.bf16.gmra.mrb[8].mxu1 %vm749_vm4, %v510_v32 }
 0x1c3   :  { %v1168_v46 = vpop.permute.xlu1 %1167  ;;  %v1146_v34 = vpop.permute.xlu0 %1145 }
 0x1c4   :  { %v1208_v22 = vsel %vm494_vm3, %v1185_v55, %v1168_v46  ;;  %v1188_v35 = vsel %vm469_vm2, %v4116_v1, %v1146_v34 }
 0x1c5   :  { %1994 = vmatprep.mubr.msk.bf16.mxu1 %vm749_vm4, %v1208_v22 }
 0x1c7   :  { %v1170_v16 = vpop.permute.xlu1 %1169  ;;  %v648_v14 = vpop.permute.xlu0 %647 }
 0x1c8   :  { %v1210_v31 = vsel %vm494_vm3, %v1188_v35, %v1170_v16  ;;  %v688_v44 = vsel %vm494_vm3, %v666_v63, %v648_v14 }
 0x1c9   :  { %1939 = vmatmul.mubr.msk.bf16.vlgmr.msra.gmra.mrb[16].mxu0 %vm749_vm4, %v688_v44  ;;  %1995 = vmatmul.mubr.msk.bf16.vlgmr.msra.gmra.mrb[12].mxu1 %vm749_vm4, %v1210_v31 }
 0x1ca   :  { %2011 = vmatpush3.bf16.msra.mxu0 %v2105_v20 }
 0x1cb   :  { %v1150_v60 = vpop.permute.xlu1 %1149  ;;  %v1148_v10 = vpop.permute.xlu0 %1147  ;;  %2012 = vmatprep.subr.bf16.mxu0 %v2106_v4 }
 0x1cc   :  { %v1194_v9 = vsel %vm469_vm2, %v1048_v56, %v1150_v60  ;;  %v1191_v21 = vsel %vm469_vm2, %v1047_v43, %v1148_v10 }
 0x1ce   :  { %2013 = vmatpush3.bf16.msra.mxu0 %v2106_v4 }
 0x1cf   :  { %v1174_v59 = vpop.permute.xlu1 %1173  ;;  %v1172_v18 = vpop.permute.xlu0 %1171 }
 0x1d0   :  { %v1214_v58 = vsel %vm494_vm3, %v1194_v9, %v1174_v59  ;;  %v1212_v51 = vsel %vm494_vm3, %v1191_v21, %v1172_v18 }
 0x1d1   :  { %1998 = vmatprep.mubr.msk.bf16.mxu1 %vm749_vm4, %v1212_v51 }
 0x1d2   :  { %1999 = vmatmul.mubr.msk.bf16.gmra.mrb[0].mxu1 %vm749_vm4, %v1214_v58 }
 0x1d3   :  { %v1154_v62 = vpop.permute.xlu1 %1153  ;;  %v1152_v45 = vpop.permute.xlu0 %1151 }
 0x1d4   :  { %v1200_v23 = vsel %vm469_vm2, %v1050_v52, %v1154_v62  ;;  %v1197_v49 = vsel %vm469_vm2, %v1049_v41, %v1152_v45 }
 0x1d7   :  { %v1178_v48 = vpop.permute.xlu1 %1177  ;;  %v1176_v33 = vpop.permute.xlu0 %1175 }
 0x1d8   :  { %v1218_v56 = vsel %vm494_vm3, %v1200_v23, %v1178_v48  ;;  %v1216_v43 = vsel %vm494_vm3, %v1197_v49, %v1176_v33 }
 0x1d9   :  { %2002 = vmatprep.mubr.msk.bf16.mxu1 %vm749_vm4, %v1216_v43 }
 0x1da   :  { %2003 = vmatmul.mubr.msk.bf16.gmra.mrb[4].mxu1 %vm749_vm4, %v1218_v56 }
 0x1db   :  { %v1158_v6 = vpop.permute.xlu1 %1157  ;;  %v1156_v26 = vpop.permute.xlu0 %1155 }
 0x1dc   :  { %v1206_v3 = vsel %vm469_vm2, %v1052_v36, %v1158_v6  ;;  %v1203_v24 = vsel %vm469_vm2, %v1051_v30, %v1156_v26  ;;  %v1814_v36 = vld [vmem:[%s3866_s4 + $0x1] ss:$0 sm:$0xff] }
 0x1df   :  { %v1182_v29 = vpop.permute.xlu1 %1181  ;;  %v1180_v5 = vpop.permute.xlu0 %1179 }
 0x1e0   :  { %v1222_v52 = vsel %vm494_vm3, %v1206_v3, %v1182_v29  ;;  %v1220_v41 = vsel %vm494_vm3, %v1203_v24, %v1180_v5 }
 0x1e1   :  { %2006 = vmatprep.mubr.msk.bf16.mxu1 %vm749_vm4, %v1220_v41 }
 0x1e2   :  { %2007 = vmatmul.mubr.msk.bf16.gmra.mrb[8].mxu1 %vm749_vm4, %v1222_v52 }
 0x29c   :  { %v1940_v0 = vpop.f32.mrb[16].mxu0  ;;  %v1996_v2 = vpop.f32.mrb[12].mxu1 }
 0x29d   :  { %v2042_v30 = vadd.f32 %v1996_v2, %v1940_v0  ;;  %v800_v28 = vpop.f32.mrb[17].mxu0  ;;  %v1321_v38 = vpop.f32.mrb[13].mxu1  ;;  %v3784_v2 = vld [vmem:[%s3866_s4 + $0x2] ss:$0 sm:$0xff] }
 0x29e   :  { %v2043_v39 = vadd.f32 %v1321_v38, %v800_v28  ;;  %v1941_v17 = vpop.f32.mrb[18].mxu0  ;;  %v1997_v50 = vpop.f32.mrb[14].mxu1 }
 0x29f   :  { %v1407_v8 = vadd.f32 %v2042_v30, %v1814_v36  ;;  %v2044_v53 = vadd.f32 %v1997_v50, %v1941_v17  ;;  %v803_v47 = vpop.f32.mrb[19].mxu0  ;;  %v1324_v15 = vpop.f32.mrb[15].mxu1  ;;  %v2107_v17 = vld [vmem:[%s3862_s0 + $0x10] sm:$0xff] }
 0x2a0   :  { %v1405_v12 = vadd.f32 %v2043_v39, %v1814_v36  ;;  %v2045_v13 = vadd.f32 %v1324_v15, %v803_v47  ;;  %v2108_v47 = vld [vmem:[%s3862_s0] sm:$0xff] }
 0x2a1   :  { %v1408_v25 = vadd.f32 %v2044_v53, %v1814_v36  ;;  %v1423_v57 = vmax.f32 %v1407_v8, 0.0 }
 0x2a2   :  { %v1406_v37 = vadd.f32 %v2045_v13, %v1814_v36  ;;  %v1421_v27 = vmax.f32 %v1405_v12, 0.0 }
 0x2a3   :  { %v1424_v19 = vmax.f32 %v1408_v25, 0.0  ;;  %v2109_v25 = vld [vmem:[%s3862_s0 + $0x18] sm:$0xff] }
 0x2a4   :  { %v1422_v61 = vmax.f32 %v1406_v37, 0.0 }
 0x2a5   :  { %v1438_v42 = vpack.c.bf16 %v1424_v19, %v1423_v57  ;;  %v2000_v7 = vpop.f32.mrb[0].mxu1  ;;  %v2110_v19 = vld [vmem:[%s3862_s0 + $0x8] sm:$0xff] }
 0x2a6   :  { %v1437_v32 = vpack.c.bf16 %v1422_v61, %v1421_v27  ;;  %v1411_v40 = vadd.f32 %v2000_v7, %v1814_v36  ;;  %v1337_v54 = vpop.f32.mrb[1].mxu1 }
 0x2a7   :  { %v1409_v11 = vadd.f32 %v1814_v36, %v1337_v54  ;;  %v2001_v55 = vpop.f32.mrb[2].mxu1 }
 0x2a8   :  { %v1412_v46 = vadd.f32 %v2001_v55, %v1814_v36  ;;  %v1340_v34 = vpop.f32.mrb[3].mxu1  ;;  %2014 = vmatprep.mubr.msk.bf16.mxu0 %vm469_vm2, %v1437_v32  ;;  %v1427_v63 = vmax.f32 %v1411_v40, 0.0  ;;  %v2111_v55 = vld [vmem:[%s3862_s0 + $0x30] sm:$0xff] }
 0x2a9   :  { %v1410_v22 = vadd.f32 %v1814_v36, %v1340_v34  ;;  %2015 = vmatmul.mubr.msk.bf16.vlgmr.msra.gmra.mrb[20].mxu0 %vm469_vm2, %v1438_v42  ;;  %v1425_v35 = vmax.f32 %v1409_v11, 0.0 }
 0x2aa   :  { %v1428_v1 = vmax.f32 %v1412_v46, 0.0 }
 0x2ab   :  { %v1426_v16 = vmax.f32 %v1410_v22, 0.0 }
 0x2ac   :  { %v1440_v14 = vpack.c.bf16 %v1428_v1, %v1427_v63  ;;  %v2112_v63 = vld [vmem:[%s3862_s0 + $0x20] sm:$0xff] }
 0x2ad   :  { %v1439_v31 = vpack.c.bf16 %v1426_v16, %v1425_v35  ;;  %v2004_v44 = vpop.f32.mrb[4].mxu1 }
 0x2ae   :  { %v1415_v60 = vadd.f32 %v2004_v44, %v1814_v36  ;;  %v1353_v10 = vpop.f32.mrb[5].mxu1 }
 0x2af   :  { %v1413_v9 = vadd.f32 %v1814_v36, %v1353_v10  ;;  %v2005_v21 = vpop.f32.mrb[6].mxu1  ;;  %2018 = vmatprep.mubr.msk.bf16.mxu0 %vm469_vm2, %v1439_v31 }
 0x2b0   :  { %v1416_v59 = vadd.f32 %v2005_v21, %v1814_v36  ;;  %v1356_v18 = vpop.f32.mrb[7].mxu1  ;;  %v1431_v51 = vmax.f32 %v1415_v60, 0.0  ;;  %v2114_v60 = vld [vmem:[%s3862_s0 + $0x28] sm:$0xff] }
 0x2b1   :  { %v1414_v58 = vadd.f32 %v1814_v36, %v1356_v18  ;;  %2019 = vmatmul.mubr.msk.bf16.gmra.mrb[24].mxu0 %vm469_vm2, %v1440_v14  ;;  %v1429_v45 = vmax.f32 %v1413_v9, 0.0  ;;  %v2113_v14 = vld [vmem:[%s3862_s0 + $0x38] sm:$0xff] }
 0x2b2   :  { %v1432_v62 = vmax.f32 %v1416_v59, 0.0 }
 0x2b3   :  { %v1430_v23 = vmax.f32 %v1414_v58, 0.0 }
 0x2b4   :  { %v1442_v49 = vpack.c.bf16 %v1432_v62, %v1431_v51 }
 0x2b5   :  { %v1441_v48 = vpack.c.bf16 %v1430_v23, %v1429_v45  ;;  %v2008_v33 = vpop.f32.mrb[8].mxu1  ;;  %v2115_v45 = vld [vmem:[%s3862_s0 + $0x50] sm:$0xff] }
 0x2b6   :  { %v1419_v56 = vadd.f32 %v2008_v33, %v1814_v36  ;;  %v1369_v43 = vpop.f32.mrb[9].mxu1  ;;  %v2116_v33 = vld [vmem:[%s3862_s0 + $0x40] sm:$0xff] }
 0x2b7   :  { %v1417_v6 = vadd.f32 %v1814_v36, %v1369_v43  ;;  %v2009_v26 = vpop.f32.mrb[10].mxu1  ;;  %2022 = vmatprep.mubr.msk.bf16.mxu0 %vm469_vm2, %v1441_v48 }
 0x2b8   :  { %v1420_v3 = vadd.f32 %v2009_v26, %v1814_v36  ;;  %v1372_v24 = vpop.f32.mrb[11].mxu1  ;;  %v1435_v5 = vmax.f32 %v1419_v56, 0.0  ;;  %v2117_v26 = vld [vmem:[%s3862_s0 + $0x58] sm:$0xff] }
 0x2b9   :  { %v1418_v29 = vadd.f32 %v1814_v36, %v1372_v24  ;;  %2023 = vmatmul.mubr.msk.bf16.gmra.mrb[28].mxu0 %vm469_vm2, %v1442_v49  ;;  %v1433_v41 = vmax.f32 %v1417_v6, 0.0 }
 0x2ba   :  { %v1436_v52 = vmax.f32 %v1420_v3, 0.0 }
 0x2bb   :  { %v1434_v20 = vmax.f32 %v1418_v29, 0.0  ;;  %v2118_v29 = vld [vmem:[%s3862_s0 + $0x48] sm:$0xff] }
 0x2bc   :  { %v1444_v4 = vpack.c.bf16 %v1436_v52, %v1435_v5 }
 0x2bd   :  { %v1443_v0 = vpack.c.bf16 %v1434_v20, %v1433_v41 }
 0x2bf   :  { %2026 = vmatprep.mubr.msk.bf16.mxu0 %vm469_vm2, %v1443_v0 }
 0x2c1   :  { %2027 = vmatmul.mubr.msk.bf16.gmra.mrb[32].mxu0 %vm469_vm2, %v1444_v4 }
 0x37c   :  { %v2016_v30 = vpop.f32.mrb[20].mxu0 }
 0x37d   :  { %v1533_v36 = vadd.f32 %v2016_v30, %v3784_v2  ;;  %v1524_v28 = vpop.f32.mrb[21].mxu0 }
 0x37e   :  { %v1525_v38 = vadd.f32 %v3784_v2, %v1524_v28  ;;  %v2017_v39 = vpop.f32.mrb[22].mxu0  ;;  %v2119_v28 = vld [vmem:[%s3862_s0 + $0x70] sm:$0xff] }
 0x37f   :  { %v1589_v50 = vadd.f32 %v2107_v17, %v1533_v36  ;;  %v1536_v8 = vadd.f32 %v2017_v39, %v3784_v2  ;;  %v1527_v53 = vpop.f32.mrb[23].mxu0 }
 0x380   :  { %v1587_v15 = vadd.f32 %v2108_v47, %v1525_v38  ;;  %v1528_v12 = vadd.f32 %v3784_v2, %v1527_v53 }
 0x381   :  { %v1605_v13 = vmax.f32 %v1589_v50, 0.0  ;;  %v1590_v37 = vadd.f32 %v2109_v25, %v1536_v8  ;;  %v2120_v50 = vld [vmem:[%s3862_s0 + $0x60] sm:$0xff]  ;;  %v2122_v25 = vld [vmem:[%s3862_s0 + $0x68] sm:$0xff] }
 0x382   :  { %v1603_v57 = vmax.f32 %v1587_v15, 0.0  ;;  %v1588_v27 = vadd.f32 %v2110_v19, %v1528_v12  ;;  %v2121_v15 = vld [vmem:[%s3862_s0 + $0x78] sm:$0xff] }
 0x383   :  { %1621 = vst [vmem:[#allocation2 + $0x10] sm:$0xff] %v1605_v13  ;;  %v1606_v61 = vmax.f32 %v1590_v37, 0.0 }
 0x384   :  { %1619 = vst [vmem:[#allocation2] sm:$0xff] %v1603_v57  ;;  %v1604_v42 = vmax.f32 %v1588_v27, 0.0  ;;  %v2020_v7 = vpop.f32.mrb[24].mxu0 }
 0x385   :  { %1622 = vst [vmem:[#allocation2 + $0x18] sm:$0xff] %v1606_v61  ;;  %v1549_v32 = vadd.f32 %v2020_v7, %v3784_v2  ;;  %v1540_v40 = vpop.f32.mrb[25].mxu0 }
 0x386   :  { %1620 = vst [vmem:[#allocation2 + $0x8] sm:$0xff] %v1604_v42  ;;  %v1541_v54 = vadd.f32 %v3784_v2, %v1540_v40  ;;  %v2021_v11 = vpop.f32.mrb[26].mxu0 }
 0x387   :  { %v1593_v46 = vadd.f32 %v2111_v55, %v1549_v32  ;;  %v1552_v34 = vadd.f32 %v2021_v11, %v3784_v2  ;;  %v1543_v22 = vpop.f32.mrb[27].mxu0 }
 0x388   :  { %v1591_v1 = vadd.f32 %v2112_v63, %v1541_v54  ;;  %v1544_v35 = vadd.f32 %v3784_v2, %v1543_v22 }
 0x389   :  { %v1609_v16 = vmax.f32 %v1593_v46, 0.0  ;;  %v1594_v31 = vadd.f32 %v2113_v14, %v1552_v34 }
 0x38a   :  { %v1607_v44 = vmax.f32 %v1591_v1, 0.0  ;;  %v1592_v10 = vadd.f32 %v2114_v60, %v1544_v35 }
 0x38b   :  { %1625 = vst [vmem:[#allocation2 + $0x30] sm:$0xff] %v1609_v16  ;;  %v1610_v9 = vmax.f32 %v1594_v31, 0.0 }
 0x38c   :  { %1623 = vst [vmem:[#allocation2 + $0x20] sm:$0xff] %v1607_v44  ;;  %v1608_v21 = vmax.f32 %v1592_v10, 0.0  ;;  %v2024_v59 = vpop.f32.mrb[28].mxu0 }
 0x38d   :  { %1626 = vst [vmem:[#allocation2 + $0x38] sm:$0xff] %v1610_v9  ;;  %v1565_v18 = vadd.f32 %v2024_v59, %v3784_v2  ;;  %v1556_v58 = vpop.f32.mrb[29].mxu0 }
 0x38e   :  { %1624 = vst [vmem:[#allocation2 + $0x28] sm:$0xff] %v1608_v21  ;;  %v1557_v51 = vadd.f32 %v3784_v2, %v1556_v58  ;;  %v2025_v62 = vpop.f32.mrb[30].mxu0 }
 0x38f   :  { %v1597_v23 = vadd.f32 %v2115_v45, %v1565_v18  ;;  %v1568_v49 = vadd.f32 %v2025_v62, %v3784_v2  ;;  %v1559_v48 = vpop.f32.mrb[31].mxu0 }
 0x390   :  { %v1595_v56 = vadd.f32 %v2116_v33, %v1557_v51  ;;  %v1560_v43 = vadd.f32 %v3784_v2, %v1559_v48 }
 0x391   :  { %v1613_v6 = vmax.f32 %v1597_v23, 0.0  ;;  %v1598_v3 = vadd.f32 %v2117_v26, %v1568_v49 }
 0x392   :  { %v1611_v24 = vmax.f32 %v1595_v56, 0.0  ;;  %v1596_v5 = vadd.f32 %v2118_v29, %v1560_v43 }
 0x393   :  { %1629 = vst [vmem:[#allocation2 + $0x50] sm:$0xff] %v1613_v6  ;;  %v1614_v52 = vmax.f32 %v1598_v3, 0.0 }
 0x394   :  { %1627 = vst [vmem:[#allocation2 + $0x40] sm:$0xff] %v1611_v24  ;;  %v1612_v41 = vmax.f32 %v1596_v5, 0.0  ;;  %v2028_v20 = vpop.f32.mrb[32].mxu0 }
 0x395   :  { %1630 = vst [vmem:[#allocation2 + $0x58] sm:$0xff] %v1614_v52  ;;  %v1581_v4 = vadd.f32 %v2028_v20, %v3784_v2  ;;  %v1572_v0 = vpop.f32.mrb[33].mxu0 }
 0x396   :  { %1628 = vst [vmem:[#allocation2 + $0x48] sm:$0xff] %v1612_v41  ;;  %v1573_v30 = vadd.f32 %v3784_v2, %v1572_v0  ;;  %v2029_v36 = vpop.f32.mrb[34].mxu0 }
 0x397   :  { %v1601_v38 = vadd.f32 %v2119_v28, %v1581_v4  ;;  %v1584_v39 = vadd.f32 %v2029_v36, %v3784_v2  ;;  %v1575_v17 = vpop.f32.mrb[35].mxu0 }
 0x398   :  { %v1599_v8 = vadd.f32 %v2120_v50, %v1573_v30  ;;  %v1576_v53 = vadd.f32 %v3784_v2, %v1575_v17 }
 0x399   :  { %v1617_v47 = vmax.f32 %v1601_v38, 0.0  ;;  %v1602_v12 = vadd.f32 %v2121_v15, %v1584_v39 }
 0x39a   :  { %v1615_v13 = vmax.f32 %v1599_v8, 0.0  ;;  %v1600_v37 = vadd.f32 %v2122_v25, %v1576_v53 }
 0x39b   :  { %1633 = vst [vmem:[#allocation2 + $0x70] sm:$0xff] %v1617_v47  ;;  %v1618_v57 = vmax.f32 %v1602_v12, 0.0 }
 0x39c   :  { %1631 = vst [vmem:[#allocation2 + $0x60] sm:$0xff] %v1615_v13  ;;  %v1616_v19 = vmax.f32 %v1600_v37, 0.0 }
 0x39d   :  { %1634 = vst [vmem:[#allocation2 + $0x78] sm:$0xff] %v1618_v57 }
 0x39e   :  { %1632 = vst [vmem:[#allocation2 + $0x68] sm:$0xff] %v1616_v19 }
 0x39f   :  { %2134 = shalt.err (!%p2131_p4)
}
 0x3a0   :  { %s2135_s19 = scalar_lea.hbm %s3868_s6, 2048 }
 0x3a1   :  { %p2136_p5 = scmp.ne.s32.totalorder %s3868_s6, %s2135_s19  ;;  %p2139_p6 = scmp.lt.u32.totalorder %s2135_s19, %s3868_s6 }
 0x3a3   :  { %p2141_p7 = pnand %p2139_p6, %p2136_p5 }
 0x3a5   :  { %2144 = shalt.err (!%p2141_p7)
}
 0x3a6   :  { %s2150_s1 = smov 128   ;;  %s2151_s25 = smov 8  }
 0x3a7   :  { %1646 = dma.vmem_to_hbm [thread:$0]  %s1641_s14, 2048, %s3868_s6, [#allocation3], %s2150_s1, %s2150_s1, %s2151_s25  }
 0x3a8   :  { %2145 = dma.done.wait [#allocation3], 2048  }
 0x3a9   :  { %2146 = vsyncadd [#allocation3], 4294965248 }
 0x3aa   :  { %1650 = vsyncpa [#allocation3], 1 }

</bundles_post_ra>
